<compile_context>
chip_gen: v7x
topology: tpu7x:2x2x1
jax: 0.10.0
libtpu: 0.0.40
codegen_flags: <defaults>
</compile_context>

<pallas_src>
import jax
import jax.numpy as jnp
from jax.experimental import pallas as pl
from jax.experimental.pallas import tpu as pltpu

EMB = 32          # word/emo embedding dim (conv in_channels)
SEQ = 16          # tokens per sentence / comment
K1, K2 = 2, 3     # conv kernel sizes
CONV_OUT = 64     # out_channels of each conv
LATENT = 2 * CONV_OUT        # 128
ATT_DIM = 100
ATT_PAD = 128
K_CO = 80
K_PAD = 128
NUM_CLASSES = 2
EPS = 1e-7


def _round_up(a, b):
    return (a + b - 1) // b * b


# ----------------------------------------------------------------------------
# Kernel 1: fused Conv1d(k=2)+Conv1d(k=3) + ReLU + global max-pool, TM items
# per grid step, 128-lane-wide fused weights.
# ----------------------------------------------------------------------------
def _conv_pool_kernel(x_ref, w_ref, b_ref, out_ref):
    TM, S, C = x_ref.shape
    L = 2 * CONV_OUT
    x2d = x_ref[...].reshape(TM * S, C)
    # One matmul per tap over ALL rows; results then shift-added (no operand
    # relayout from misaligned row slices of x).
    y0 = jnp.dot(x2d, w_ref[0], preferred_element_type=jnp.float32).reshape(TM, S, L)
    y1 = jnp.dot(x2d, w_ref[1], preferred_element_type=jnp.float32).reshape(TM, S, L)
    y2 = jnp.dot(x2d, w_ref[2], preferred_element_type=jnp.float32).reshape(TM, S, L)
    b3 = b_ref[...].reshape(1, 1, L)

    # taps 0+1: complete conv1 output for t in [0, S-2]  (w1 has only 2 taps)
    acc12 = y0[:, 0:S - 1, :] + y1[:, 1:S, :]            # (TM, S-1, 128)
    # + tap 2: complete conv1 AND conv2 output for t in [0, S-3]
    acc_full = acc12[:, 0:S - 2, :] + y2[:, 2:S, :]      # (TM, S-2, 128)

    m = jnp.max(jnp.maximum(acc_full + b3, 0.0), axis=1)  # (TM, 128)

    # conv1's last valid position t = S-2 (first 64 lanes only; conv2 lanes of
    # this row are invalid -> mask to 0, which never beats relu-ed conv2 max).
    extra = jnp.maximum(acc12[:, S - 2, :] + b_ref[...], 0.0)   # (TM, 128)
    lane = jax.lax.broadcasted_iota(jnp.int32, (TM, L), 1)
    extra = jnp.where(lane < CONV_OUT, extra, 0.0)

    out_ref[...] = jnp.maximum(m, extra)


def conv_relu_maxpool(x, w_fused, b_fused):
    """x: (N, S, C) float32, w_fused: (3, C, 128), b_fused: (1, 128) -> (N, 128)."""
    N, S, C = x.shape
    TM = min(128, _round_up(N, 8))
    N_pad = _round_up(N, TM)
    if N_pad != N:
        x = jnp.pad(x, ((0, N_pad - N), (0, 0), (0, 0)))
    out = pl.pallas_call(
        _conv_pool_kernel,
        out_shape=jax.ShapeDtypeStruct((N_pad, 2 * CONV_OUT), jnp.float32),
        grid=(N_pad // TM,),
        in_specs=[
            pl.BlockSpec((TM, S, C), lambda n: (n, 0, 0)),
            pl.BlockSpec((3, C, 2 * CONV_OUT), lambda n: (0, 0, 0)),
            pl.BlockSpec((1, 2 * CONV_OUT), lambda n: (0, 0)),
        ],
        out_specs=pl.BlockSpec((TM, 2 * CONV_OUT), lambda n: (n, 0)),
        compiler_params=pltpu.CompilerParams(dimension_semantics=("parallel",)),
    )(x, w_fused, b_fused)
    return out[:N]


# ----------------------------------------------------------------------------
# Kernel 2: fused AttentionLayer + CoAttention + FC + softmax, per batch item.
# ----------------------------------------------------------------------------
def _softmax_lastdim(x):
    m = jnp.max(x, axis=-1, keepdims=True)
    e = jnp.exp(x - m)
    return e / jnp.sum(e, axis=-1, keepdims=True)


def _head_kernel(xb_ref, xd_ref, W_ref, b_ref, u_ref, Wl_ref, Wc_ref, Ws_ref,
                 whs_ref, whc_ref, Wfc_ref, bfc_ref,
                 preds_ref, As_ref, Ac_ref, ait_ref):
    xb = xb_ref[0]                                 # (Ns, 128)  sentence_rep
    xd = xd_ref[0]                                 # (Nc, 128)  comment_rep

    # ---- AttentionLayer on xd (torch: no max-subtraction before exp) ----
    uit = jnp.tanh(jnp.dot(xd, W_ref[...], preferred_element_type=jnp.float32)
                   + b_ref[...])                                # (Nc, 128pad)
    # 1-lane-output matmul replaced by VPU multiply + lane reduce
    a = jnp.exp(jnp.sum(uit * u_ref[...], axis=-1, keepdims=True))   # (Nc, 1)
    a = a / (jnp.sum(a, axis=0, keepdims=True) + EPS)
    xd_a = jnp.sum(xd * a, axis=0, keepdims=True)               # (1, 128)
    ait_ref[0] = a.reshape(1, -1)                               # lane-dense (1, Nc)

    # ---- CoAttention (no explicit transposes of the (N,128) reps) ----
    cn = (((1,), (1,)), ((), ()))     # contract last dims
    xdWl = jnp.dot(xd, Wl_ref[...], preferred_element_type=jnp.float32)       # (Nc,128)
    L = jnp.tanh(jax.lax.dot_general(xdWl, xb, cn,
                                     preferred_element_type=jnp.float32))     # (Nc,Ns)
    Ws_sT = jax.lax.dot_general(Ws_ref[...], xb, cn,
                                preferred_element_type=jnp.float32)           # (Kp,Ns)
    Wc_cT = jax.lax.dot_general(Wc_ref[...], xd, cn,
                                preferred_element_type=jnp.float32)           # (Kp,Nc)
    Hs = jnp.tanh(Ws_sT + jnp.dot(Wc_cT, L, preferred_element_type=jnp.float32))
    Hc = jnp.tanh(Wc_cT + jax.lax.dot_general(Ws_sT, L, cn,
                                              preferred_element_type=jnp.float32))
    # row-vector reductions instead of (1,K)x(K,N) matmuls
    As = _softmax_lastdim(jnp.sum(whs_ref[...] * Hs, axis=0, keepdims=True))  # (1,Ns)
    Ac = _softmax_lastdim(jnp.sum(whc_ref[...] * Hc, axis=0, keepdims=True))  # (1,Nc)
    As_ref[0] = As                                              # lane-dense
    Ac_ref[0] = Ac
    co_s = jnp.dot(As, xb, preferred_element_type=jnp.float32)  # (1, 128)
    co_c = jnp.dot(Ac, xd, preferred_element_type=jnp.float32)  # (1, 128)

    # ---- final FC (split-sum avoids the lane concat) + softmax ----
    logits = (jnp.dot(xd_a, Wfc_ref[0], preferred_element_type=jnp.float32)
              + jnp.dot(co_s, Wfc_ref[1], preferred_element_type=jnp.float32)
              + jnp.dot(co_c, Wfc_ref[2], preferred_element_type=jnp.float32)
              + bfc_ref[...])
    preds_ref[0] = _softmax_lastdim(logits)                     # (1, 2)


def head_pass(xb, xd, p):
    B, Ns, _ = xb.shape
    _, Nc, _ = xd.shape

    # zero-pad the odd dims (100 -> 128, 80 -> 128); padding is mathematically
    # inert (padded weights are zero) but removes masked vregs / relayouts.
    W_att = jnp.pad(p['W_att'], ((0, 0), (0, ATT_PAD - ATT_DIM)))
    b_att = jnp.pad(p['b_att'], ((0, 0), (0, ATT_PAD - ATT_DIM)))
    u_row = jnp.pad(p['u_att'].T, ((0, 0), (0, ATT_PAD - ATT_DIM)))   # (1, 128)
    Wc_p = jnp.pad(p['Wc'], ((0, K_PAD - K_CO), (0, 0)))
    Ws_p = jnp.pad(p['Ws'], ((0, K_PAD - K_CO), (0, 0)))
    whs_c = jnp.pad(p['whs'].T, ((0, K_PAD - K_CO), (0, 0)))          # (128, 1)
    whc_c = jnp.pad(p['whc'].T, ((0, K_PAD - K_CO), (0, 0)))
    Wfc3 = p['Wfc'].reshape(3, LATENT, NUM_CLASSES)

    def full(shape):
        return pl.BlockSpec(shape, lambda b, _n=len(shape): (0,) * _n)

    out_shape = (
        jax.ShapeDtypeStruct((B, 1, NUM_CLASSES), jnp.float32),
        jax.ShapeDtypeStruct((B, 1, Ns), jnp.float32),
        jax.ShapeDtypeStruct((B, 1, Nc), jnp.float32),
        jax.ShapeDtypeStruct((B, 1, Nc), jnp.float32),
    )
    in_specs = [
        pl.BlockSpec((1, Ns, LATENT), lambda b: (b, 0, 0)),
        pl.BlockSpec((1, Nc, LATENT), lambda b: (b, 0, 0)),
        full((LATENT, ATT_PAD)),
        full((1, ATT_PAD)),
        full((1, ATT_PAD)),
        full((LATENT, LATENT)),
        full((K_PAD, LATENT)),
        full((K_PAD, LATENT)),
        full((K_PAD, 1)),
        full((K_PAD, 1)),
        full((3, LATENT, NUM_CLASSES)),
        full((1, NUM_CLASSES)),
    ]
    out_specs = (
        pl.BlockSpec((1, 1, NUM_CLASSES), lambda b: (b, 0, 0)),
        pl.BlockSpec((1, 1, Ns), lambda b: (b, 0, 0)),
        pl.BlockSpec((1, 1, Nc), lambda b: (b, 0, 0)),
        pl.BlockSpec((1, 1, Nc), lambda b: (b, 0, 0)),
    )
    preds3, As, Ac, ait = pl.pallas_call(
        _head_kernel,
        out_shape=out_shape,
        grid=(B,),
        in_specs=in_specs,
        out_specs=out_specs,
        compiler_params=pltpu.CompilerParams(dimension_semantics=("parallel",)),
    )(xb, xd, W_att, b_att, u_row, p['Wl'], Wc_p, Ws_p, whs_c, whc_c, Wfc3, p['bfc'])
    return (preds3[:, 0, :],
            jnp.swapaxes(As, 1, 2),      # (B, Ns, 1)
            jnp.swapaxes(Ac, 1, 2),      # (B, Nc, 1)
            jnp.swapaxes(ait, 1, 2))     # (B, Nc, 1)


# ----------------------------------------------------------------------------
# Full BACCA forward (embedding gather is plain-JAX glue).
# ----------------------------------------------------------------------------
def bacca_forward(content, comments, emo_emb, p):
    # TODO(synk): the torch module also computes the unused word-embedding
    # branch (`embedded_content`); it has no effect on outputs, so it is skipped.
    emb_content = emo_emb[content]          # (B, NS, S, EMB)
    emb_comment = emo_emb[comments]         # (B, NC, S, EMB)
    B, NS, S, C = emb_content.shape
    NC = emb_comment.shape[1]

    # fused conv weights: 3 taps x (C, 128); conv1 occupies lanes [0,64),
    # conv2 lanes [64,128); conv1's missing 3rd tap is zero.
    w_fused = jnp.concatenate(
        [jnp.concatenate([p['w1'], jnp.zeros((1, C, CONV_OUT), jnp.float32)], axis=0),
         p['w2']], axis=2)                                      # (3, C, 128)
    b_fused = jnp.concatenate([p['b1'], p['b2']], axis=1)       # (1, 128)

    # Single pallas_call for content + comment conv passes.
    x_all = jnp.concatenate([emb_content.reshape(B * NS, S, C),
                             emb_comment.reshape(B * NC, S, C)], axis=0)
    feats = conv_relu_maxpool(x_all, w_fused, b_fused)          # (B*(NS+NC), 128)
    xb = feats[:B * NS].reshape(B, NS, LATENT)
    xd = feats[B * NS:].reshape(B, NC, LATENT)
    return head_pass(xb, xd, p)


# ----------------------------------------------------------------------------
# Pure-JAX reference for verification.
# ----------------------------------------------------------------------------
def reference_forward(content, comments, emo_emb, p):
    emb_content = emo_emb[content]
    emb_comment = emo_emb[comments]
    B, NS, S, C = emb_content.shape
    NC = emb_comment.shape[1]

    def conv_feats(x):
        a1 = (jnp.einsum('nsc,co->nso', x[:, :S - 1], p['w1'][0]) +
              jnp.einsum('nsc,co->nso', x[:, 1:], p['w1'][1]) + p['b1'])
        f1 = jnp.max(jax.nn.relu(a1), axis=1)
        a2 = (jnp.einsum('nsc,co->nso', x[:, :S - 2], p['w2'][0]) +
              jnp.einsum('nsc,co->nso', x[:, 1:S - 1], p['w2'][1]) +
              jnp.einsum('nsc,co->nso', x[:, 2:], p['w2'][2]) + p['b2'])
        f2 = jnp.max(jax.nn.relu(a2), axis=1)
        return jnp.concatenate([f1, f2], axis=1)

    xb = conv_feats(emb_content.reshape(B * NS, S, C)).reshape(B, NS, LATENT)
    xd = conv_feats(emb_comment.reshape(B * NC, S, C)).reshape(B, NC, LATENT)

    def head(xb_b, xd_b):
        uit = jnp.tanh(xd_b @ p['W_att'] + p['b_att'][0])
        a = jnp.exp(uit @ p['u_att'])
        a = a / (jnp.sum(a, axis=0, keepdims=True) + EPS)
        xd_a = jnp.sum(xd_b * a, axis=0)
        L = jnp.tanh((xd_b @ p['Wl']) @ xb_b.T)
        Ws_sT = p['Ws'] @ xb_b.T
        Wc_cT = p['Wc'] @ xd_b.T
        Hs = jnp.tanh(Ws_sT + Wc_cT @ L)
        Hc = jnp.tanh(Wc_cT + Ws_sT @ L.T)
        As = jax.nn.softmax(p['whs'] @ Hs, axis=1)
        Ac = jax.nn.softmax(p['whc'] @ Hc, axis=1)
        co_s = (As @ xb_b)[0]
        co_c = (Ac @ xd_b)[0]
        co = jnp.concatenate([xd_a, co_s, co_c])
        preds = jax.nn.softmax(co @ p['Wfc'] + p['bfc'][0])
        return preds, As.T, Ac.T, a

    return jax.vmap(head)(xb, xd)


def init_params(key):
    ks = jax.random.split(key, 14)
    s = 0.1
    return {
        'w1': jax.random.normal(ks[0], (K1, EMB, CONV_OUT), jnp.float32) * s,
        'b1': jax.random.normal(ks[1], (1, CONV_OUT), jnp.float32) * s,
        'w2': jax.random.normal(ks[2], (K2, EMB, CONV_OUT), jnp.float32) * s,
        'b2': jax.random.normal(ks[3], (1, CONV_OUT), jnp.float32) * s,
        'W_att': jax.random.normal(ks[4], (LATENT, ATT_DIM), jnp.float32) * s,
        'b_att': jax.random.normal(ks[5], (1, ATT_DIM), jnp.float32) * s,
        'u_att': jax.random.normal(ks[6], (ATT_DIM, 1), jnp.float32) * s,
        'Wl': jax.random.normal(ks[7], (LATENT, LATENT), jnp.float32) * s,
        'Wc': jax.random.normal(ks[8], (K_CO, LATENT), jnp.float32) * s,
        'Ws': jax.random.normal(ks[9], (K_CO, LATENT), jnp.float32) * s,
        'whs': jax.random.normal(ks[10], (1, K_CO), jnp.float32) * s,
        'whc': jax.random.normal(ks[11], (1, K_CO), jnp.float32) * s,
        'Wfc': jax.random.normal(ks[12], (3 * LATENT, NUM_CLASSES), jnp.float32) * s,
        'bfc': jax.random.normal(ks[13], (1, NUM_CLASSES), jnp.float32) * s,
    }


if __name__ == "__main__":
    key = jax.random.PRNGKey(0)
    k_data, k_params = jax.random.split(key)
    kd = jax.random.split(k_data, 4)

    B, NS, NC, VOCAB = 2, 4, 6, 50
    content = jax.random.randint(kd[0], (B, NS, SEQ), 0, VOCAB)
    comments = jax.random.randint(kd[1], (B, NC, SEQ), 0, VOCAB)
    emo_emb = jax.random.normal(kd[2], (VOCAB, EMB), jnp.float32) * 0.5
    word_emb = jax.random.normal(kd[3], (VOCAB, EMB), jnp.float32) * 0.5  # unused branch
    params = init_params(k_params)

    preds, A_S, A_C, ait = bacca_forward(content, comments, emo_emb, params)
    jax.block_until_ready(preds)

    ref_preds, ref_As, ref_Ac, ref_ait = reference_forward(content, comments, emo_emb, params)
    for got, want in ((preds, ref_preds), (A_S, ref_As), (A_C, ref_Ac), (ait, ref_ait)):
        assert got.shape == want.shape, (got.shape, want.shape)
        assert jnp.allclose(got, want, rtol=1e-3, atol=1e-3)

    print("KERNEL_OK")
</pallas_src>

<mosaic_0001>
module attributes {stable_mosaic.version = 11 : i64} {
  func.func @_conv_pool_kernel(%arg0: i32, %arg1: memref<24x16x32xf32, #tpu.memory_space<vmem>>, %arg2: memref<3x32x128xf32, #tpu.memory_space<vmem>>, %arg3: memref<1x128xf32, #tpu.memory_space<vmem>>, %arg4: memref<24x128xf32, #tpu.memory_space<vmem>>) attributes {dimension_semantics = [#tpu.dimension_semantics<parallel>], iteration_bounds = array<i64: 1>, scalar_prefetch = 0 : i64, scratch_operands = 0 : i64, tpu.core_type = #tpu.core_type<tc>, window_params = [{transform_indices = @transform_0, window_bounds = array<i64: 24, 16, 32>}, {pipeline_mode = #tpu.pipeline_mode<synchronous>, transform_indices = @transform_1, window_bounds = array<i64: 3, 32, 128>}, {pipeline_mode = #tpu.pipeline_mode<synchronous>, transform_indices = @transform_2, window_bounds = array<i64: 1, 128>}, {transform_indices = @transform_3, window_bounds = array<i64: 24, 128>}]} {
    %c0 = arith.constant 0 : index
    %c0_0 = arith.constant 0 : index
    %c0_1 = arith.constant 0 : index
    %0 = vector.load %arg1[%c0, %c0_0, %c0_1] : memref<24x16x32xf32, #tpu.memory_space<vmem>>, vector<24x16x32xf32>
    %1 = vector.shape_cast %0 : vector<24x16x32xf32> to vector<384x32xf32>
    %c0_2 = arith.constant 0 : index
    %c0_3 = arith.constant 0 : index
    %c0_4 = arith.constant 0 : index
    %2 = vector.load %arg2[%c0_2, %c0_3, %c0_4] : memref<3x32x128xf32, #tpu.memory_space<vmem>>, vector<1x32x128xf32>
    %3 = vector.shape_cast %2 : vector<1x32x128xf32> to vector<32x128xf32>
    %cst = arith.constant dense<0.000000e+00> : vector<384x128xf32>
    %4 = tpu.matmul %1, %3, %cst {dimension_numbers = #tpu.dot_dimension_numbers<[1], [0], [0], [1], [0, 0, 1, 1], [], []>} : vector<384x32xf32>, vector<32x128xf32>, vector<384x128xf32> -> vector<384x128xf32>
    %5 = vector.shape_cast %4 : vector<384x128xf32> to vector<24x16x128xf32>
    %c1 = arith.constant 1 : index
    %c0_5 = arith.constant 0 : index
    %c0_6 = arith.constant 0 : index
    %6 = vector.load %arg2[%c1, %c0_5, %c0_6] : memref<3x32x128xf32, #tpu.memory_space<vmem>>, vector<1x32x128xf32>
    %7 = vector.shape_cast %6 : vector<1x32x128xf32> to vector<32x128xf32>
    %cst_7 = arith.constant dense<0.000000e+00> : vector<384x128xf32>
    %8 = tpu.matmul %1, %7, %cst_7 {dimension_numbers = #tpu.dot_dimension_numbers<[1], [0], [0], [1], [0, 0, 1, 1], [], []>} : vector<384x32xf32>, vector<32x128xf32>, vector<384x128xf32> -> vector<384x128xf32>
    %9 = vector.shape_cast %8 : vector<384x128xf32> to vector<24x16x128xf32>
    %c2 = arith.constant 2 : index
    %c0_8 = arith.constant 0 : index
    %c0_9 = arith.constant 0 : index
    %10 = vector.load %arg2[%c2, %c0_8, %c0_9] : memref<3x32x128xf32, #tpu.memory_space<vmem>>, vector<1x32x128xf32>
    %11 = vector.shape_cast %10 : vector<1x32x128xf32> to vector<32x128xf32>
    %cst_10 = arith.constant dense<0.000000e+00> : vector<384x128xf32>
    %12 = tpu.matmul %1, %11, %cst_10 {dimension_numbers = #tpu.dot_dimension_numbers<[1], [0], [0], [1], [0, 0, 1, 1], [], []>} : vector<384x32xf32>, vector<32x128xf32>, vector<384x128xf32> -> vector<384x128xf32>
    %13 = vector.shape_cast %12 : vector<384x128xf32> to vector<24x16x128xf32>
    %c0_11 = arith.constant 0 : index
    %c0_12 = arith.constant 0 : index
    %14 = vector.load %arg3[%c0_11, %c0_12] : memref<1x128xf32, #tpu.memory_space<vmem>>, vector<1x128xf32>
    %15 = vector.shape_cast %14 : vector<1x128xf32> to vector<1x1x128xf32>
    %16 = vector.extract_strided_slice %5 {offsets = [0, 0, 0], sizes = [24, 15, 128], strides = [1, 1, 1]} : vector<24x16x128xf32> to vector<24x15x128xf32>
    %17 = vector.extract_strided_slice %9 {offsets = [0, 1, 0], sizes = [24, 15, 128], strides = [1, 1, 1]} : vector<24x16x128xf32> to vector<24x15x128xf32>
    %18 = arith.addf %16, %17 : vector<24x15x128xf32>
    %19 = vector.extract_strided_slice %18 {offsets = [0, 0, 0], sizes = [24, 14, 128], strides = [1, 1, 1]} : vector<24x15x128xf32> to vector<24x14x128xf32>
    %20 = vector.extract_strided_slice %13 {offsets = [0, 2, 0], sizes = [24, 14, 128], strides = [1, 1, 1]} : vector<24x16x128xf32> to vector<24x14x128xf32>
    %21 = arith.addf %19, %20 : vector<24x14x128xf32>
    %22 = vector.broadcast %15 : vector<1x1x128xf32> to vector<24x14x128xf32>
    %23 = arith.addf %21, %22 : vector<24x14x128xf32>
    %cst_13 = arith.constant 0.000000e+00 : f32
    %24 = vector.broadcast %cst_13 : f32 to vector<24x14x128xf32>
    %25 = arith.maximumf %23, %24 : vector<24x14x128xf32>
    %cst_14 = arith.constant dense<0xFF800000> : vector<24x128xf32>
    %26 = vector.multi_reduction <maximumf>, %25, %cst_14 [1] : vector<24x14x128xf32> to vector<24x128xf32>
    %27 = vector.extract_strided_slice %18 {offsets = [0, 14, 0], sizes = [24, 1, 128], strides = [1, 1, 1]} : vector<24x15x128xf32> to vector<24x1x128xf32>
    %28 = vector.shape_cast %27 : vector<24x1x128xf32> to vector<24x128xf32>
    %c0_15 = arith.constant 0 : index
    %c0_16 = arith.constant 0 : index
    %29 = vector.load %arg3[%c0_15, %c0_16] : memref<1x128xf32, #tpu.memory_space<vmem>>, vector<1x128xf32>
    %30 = vector.broadcast %29 : vector<1x128xf32> to vector<24x128xf32>
    %31 = arith.addf %28, %30 : vector<24x128xf32>
    %cst_17 = arith.constant 0.000000e+00 : f32
    %32 = vector.broadcast %cst_17 : f32 to vector<24x128xf32>
    %33 = arith.maximumf %31, %32 : vector<24x128xf32>
    %34 = tpu.iota {dimensions = array<i32: 1>} : vector<24x128xi32>
    %c64_i32 = arith.constant 64 : i32
    %35 = vector.broadcast %c64_i32 : i32 to vector<24x128xi32>
    %36 = arith.cmpi slt, %34, %35 : vector<24x128xi32>
    %cst_18 = arith.constant 0.000000e+00 : f32
    %37 = vector.broadcast %cst_18 : f32 to vector<24x128xf32>
    %38 = arith.select %36, %33, %37 : vector<24x128xi1>, vector<24x128xf32>
    %39 = arith.maximumf %26, %38 : vector<24x128xf32>
    %c0_19 = arith.constant 0 : index
    %c0_20 = arith.constant 0 : index
    %40 = vector.load %arg4[%c0_19, %c0_20] : memref<24x128xf32, #tpu.memory_space<vmem>>, vector<24x128xf32>
    tpu.vector_store %arg4[%c0_19, %c0_20], %39 {strides = array<i32>} : memref<24x128xf32, #tpu.memory_space<vmem>>, vector<24x128xf32>,
    return
  }
  func.func @transform_0(%arg0: i32) -> (i32, i32, i32) {
    %c0_i32 = arith.constant 0 : i32
    %c0_i32_0 = arith.constant 0 : i32
    %c0_i32_1 = arith.constant 0 : i32
    return %arg0, %c0_i32, %c0_i32_0 : i32, i32, i32
  }
  func.func @transform_1(%arg0: i32) -> (i32, i32, i32) {
    %c0_i32 = arith.constant 0 : i32
    %c0_i32_0 = arith.constant 0 : i32
    %c0_i32_1 = arith.constant 0 : i32
    %c0_i32_2 = arith.constant 0 : i32
    return %c0_i32, %c0_i32_0, %c0_i32_1 : i32, i32, i32
  }
  func.func @transform_2(%arg0: i32) -> (i32, i32) {
    %c0_i32 = arith.constant 0 : i32
    %c0_i32_0 = arith.constant 0 : i32
    %c0_i32_1 = arith.constant 0 : i32
    return %c0_i32, %c0_i32_0 : i32, i32
  }
  func.func @transform_3(%arg0: i32) -> (i32, i32) {
    %c0_i32 = arith.constant 0 : i32
    %c0_i32_0 = arith.constant 0 : i32
    return %arg0, %c0_i32 : i32, i32
  }
}

</mosaic_0001>

<bundles_post_ra>
// kernel: tpu_custom_call.1
= control target key start
LH: loop header
LB: loop body
LE: loop exit
PB: predicated region body
PF: predicated region fallthrough
CT: control target
= control target key end

     0   :  { %8 = vsyncpa [#allocation3], 0  ;;  %s3928_s0 = inlined_call_operand.hbm [shape: f32[24,16,32], index: 0, kind: input, shape index: {}]   ;;  %s3929_s1 = inlined_call_operand.hbm [shape: f32[3,32,128], index: 1, kind: input, shape index: {}]   ;;  %s3930_s2 = inlined_call_operand.vmem [shape: f32[1,128], index: 2, kind: input, shape index: {}]   ;;  %s3931_s3 = inlined_call_operand.hbm [shape: f32[24,128], index: 3, kind: output, shape index: {}]  }
   0x1   :  { %9 = vsyncpa [#allocation6], 0 }
   0x2   :  { %10 = vsyncpa [#allocation4], 0  ;;  %s2833_s12 = smov [#allocation2]   ;;  %s2761_s16 = scalar_lea.hbm %s3928_s0, 6144 }
   0x3   :  { %s16_s13 = sshll.u32 %s2833_s12, 4  ;;  %p2762_p0 = scmp.ne.s32.totalorder %s3928_s0, %s2761_s16  ;;  %s17_s13 = int_to_ptr.vmem [resolvable:$true] %s16_s13 }
   0x4   :  { %p2765_p1 = scmp.lt.u32.totalorder %s2761_s16, %s3928_s0 }
   0x6   :  { %p2767_p2 = pnand %p2765_p1, %p2762_p0 }
   0x8   :  { %2770 = shalt.err (!%p2767_p2)
}
   0x9   :  { %s2771_s21 = scalar_lea.vmem %s17_s13, 6144  ;;  %p2776_p4 = scmp.lt.s32.totalorder %s17_s13, %s17_s13 }
   0xa   :  { %p2772_p3 = scmp.ne.s32.totalorder %s17_s13, %s2771_s21  ;;  %p2777_p5 = scmp.lt.s32.totalorder %s2771_s21, %s2771_s21 }
   0xc   :  { %p2778_p6 = por %p2777_p5, %p2776_p4 }
   0xe   :  { %p2779_p7 = pnand %p2778_p6, %p2772_p3 }
  0x10   :  { %2782 = shalt.err (!%p2779_p7)
}
  0x11   :  { %s2834_s22 = smov 128   ;;  %s2835_s23 = smov 8  }
  0x12   :  { %22 = dma.hbm_to_vmem [thread:$0]  %s3928_s0, 6144, %s17_s13, [#allocation3], %s2834_s22, %s2834_s22, %s2835_s23  }
  0x13   :  { %s2836_s26 = smov [#allocation5]   ;;  %s2783_s30 = scalar_lea.hbm %s3929_s1, 1536 }
  0x14   :  { %s28_s27 = sshll.u32 %s2836_s26, 4  ;;  %p2784_p8 = scmp.ne.s32.totalorder %s3929_s1, %s2783_s30  ;;  %s29_s27 = int_to_ptr.vmem [resolvable:$true] %s28_s27 }
  0x15   :  { %p2787_p9 = scmp.lt.u32.totalorder %s2783_s30, %s3929_s1 }
  0x17   :  { %p2789_p10 = pnand %p2787_p9, %p2784_p8 }
  0x19   :  { %2792 = shalt.err (!%p2789_p10)
}
  0x1a   :  { %s2793_s8 = scalar_lea.vmem %s29_s27, 1536  ;;  %p2798_p12 = scmp.lt.s32.totalorder %s29_s27, %s29_s27 }
  0x1b   :  { %p2794_p11 = scmp.ne.s32.totalorder %s29_s27, %s2793_s8  ;;  %p2799_p13 = scmp.lt.s32.totalorder %s2793_s8, %s2793_s8 }
  0x1d   :  { %p2800_p0 = por %p2799_p13, %p2798_p12 }
  0x1f   :  { %p2801_p1 = pnand %p2800_p0, %p2794_p11 }
  0x21   :  { %2804 = shalt.err (!%p2801_p1)
}
  0x22   :  { %34 = dma.hbm_to_vmem [thread:$0]  %s3929_s1, 1536, %s29_s27, [#allocation6], %s2834_s22, %s2834_s22, %s2835_s23  }
  0x23   :  { %2827 = dma.done.wait [#allocation3], 6144  }
  0x24   :  { %2828 = vsyncadd [#allocation3], 4294961152 }
  0x25   :  { %2829 = dma.done.wait [#allocation6], 1536  }
  0x26   :  { %2830 = vsyncadd [#allocation6], 4294965760  ;;  %vm95_vm0 = vcmask 261120   ;;  %v91_v0 = vld [vmem:[#allocation5] sm:$0xff]  ;;  %v92_v1 = vld [vmem:[#allocation5 + $0x8] sm:$0xff]  ;;  %vm1214_vm1 = vcmask 1046528  }
  0x27   :  { %v93_v2 = vld [vmem:[#allocation5 + $0x10] sm:$0xff]  ;;  %v2727_v3 = vpack.c.bf16 %v92_v1, %v91_v0  ;;  %v94_v4 = vld [vmem:[#allocation5 + $0x18] sm:$0xff]  ;;  %v2888_v5 = vld [vmem:[#allocation2 + $0xc0] sm:$0xff]  ;;  %vm1431_vm2 = vcmask 1045504   ;;  %vm1971_vm3 = vcmask 1041409   ;;  %vm1974_vm4 = vcmask 1042434  }
  0x28   :  { %v2731_v6 = vpack.c.bf16 %v94_v4, %v93_v2  ;;  %2531 = vmatprep.mubr.msk.f32.mxu1 %vm95_vm0, %v2888_v5  ;;  %v546_v7 = vld [vmem:[#allocation5 + $0x20] sm:$0xff]  ;;  %v547_v8 = vld [vmem:[#allocation5 + $0x28] sm:$0xff]  ;;  %v2900_v16 = vld [vmem:[#allocation2 + $0xd0] sm:$0xff]  ;;  %vm1977_vm5 = vcmask 1043459   ;;  %vm1980_vm6 = vcmask 1044484   ;;  %vm1983_vm7 = vcmask 1045509  }
  0x29   :  { %2751 = vmatprep.subr.bf16.mxu1 %v2727_v3  ;;  %2728 = vmatprep.subr.bf16.mxu0 %v2727_v3  ;;  %v2892_v9 = vld [vmem:[#allocation2] sm:$0xff]  ;;  %v857_v11 = vld [vmem:[#allocation5 + $0x48] sm:$0xff]  ;;  %v2735_v12 = vpack.c.bf16 %v547_v8, %v546_v7  ;;  %v2902_v17 = vld [vmem:[#allocation2 + $0x10] sm:$0xff]  ;;  %vm1985_vm8 = vcmask 1046534   ;;  %vm1988_vm9 = vcmask 1047559  }
  0x2a   :  { %v856_v10 = vld [vmem:[#allocation5 + $0x40] sm:$0xff]  ;;  %2753 = vmatpush3.bf16.msra.mxu1 %v2727_v3  ;;  %2730 = vmatpush3.bf16.msra.mxu0 %v2727_v3  ;;  %v2896_v14 = vld [vmem:[#allocation2 + $0xc8] sm:$0xff]  ;;  %v548_v18 = vld [vmem:[#allocation5 + $0x30] sm:$0xff] }
  0x2b   :  { %2752 = vmatprep.subr.bf16.mxu1 %v2731_v6  ;;  %2732 = vmatprep.subr.bf16.mxu0 %v2731_v6  ;;  %v2743_v13 = vpack.c.bf16 %v857_v11, %v856_v10  ;;  %v2898_v15 = vld [vmem:[#allocation2 + $0x8] sm:$0xff]  ;;  %v549_v19 = vld [vmem:[#allocation5 + $0x38] sm:$0xff]  ;;  %v858_v23 = vld [vmem:[#allocation5 + $0x50] sm:$0xff] }
  0x2c   :  { %2495 = vmatprep.mubr.msk.f32.mxu0 %vm95_vm0, %v2892_v9  ;;  %v2910_v20 = vld [vmem:[#allocation2 + $0xd8] sm:$0xff]  ;;  %v2739_v22 = vpack.c.bf16 %v549_v19, %v548_v18  ;;  %v2916_v24 = vld [vmem:[#allocation2 + $0xe0] sm:$0xff]  ;;  %v2926_v28 = vld [vmem:[#allocation2 + $0xe8] sm:$0xff] }
  0x2d   :  { %v2912_v21 = vld [vmem:[#allocation2 + $0x18] sm:$0xff]  ;;  %v2918_v25 = vld [vmem:[#allocation2 + $0x20] sm:$0xff]  ;;  %v2930_v29 = vld [vmem:[#allocation2 + $0x28] sm:$0xff] }
  0x2e   :  { %2754 = vmatpush3.bf16.msra.mxu1 %v2731_v6  ;;  %2734 = vmatpush3.bf16.msra.mxu0 %v2731_v6  ;;  %v859_v26 = vld [vmem:[#allocation5 + $0x58] sm:$0xff]  ;;  %v2932_v30 = vld [vmem:[#allocation2 + $0xf0] sm:$0xff]  ;;  %v2948_v34 = vld [vmem:[#allocation2 + $0x100] sm:$0xff] }
  0x2f   :  { %2736 = vmatprep.subr.bf16.mxu1 %v2735_v12  ;;  %2744 = vmatprep.subr.bf16.mxu0 %v2743_v13  ;;  %v2747_v27 = vpack.c.bf16 %v859_v26, %v858_v23  ;;  %v2934_v31 = vld [vmem:[#allocation2 + $0x30] sm:$0xff]  ;;  %v2942_v32 = vld [vmem:[#allocation2 + $0xf8] sm:$0xff]  ;;  %v2950_v35 = vld [vmem:[#allocation2 + $0x40] sm:$0xff] }
  0x30   :  { %v2946_v33 = vld [vmem:[#allocation2 + $0x38] sm:$0xff]  ;;  %v2958_v36 = vld [vmem:[#allocation2 + $0x108] sm:$0xff]  ;;  %v2964_v38 = vld [vmem:[#allocation2 + $0x110] sm:$0xff] }
  0x31   :  { %2532 = vmatmul.mubr.msk.f32.vlgmr.msra.gmra.mrb[0].mxu1 %vm95_vm0, %v2896_v14  ;;  %2496 = vmatmul.mubr.msk.f32.vlgmr.msra.gmra.mrb[0].mxu0 %vm95_vm0, %v2898_v15  ;;  %v2962_v37 = vld [vmem:[#allocation2 + $0x48] sm:$0xff]  ;;  %v2966_v39 = vld [vmem:[#allocation2 + $0x50] sm:$0xff]  ;;  %v2974_v40 = vld [vmem:[#allocation2 + $0x118] sm:$0xff] }
  0x32   :  { %2738 = vmatpush3.bf16.msra.mxu1 %v2735_v12  ;;  %2534 = vmatprep.mubr.msk.f32.mxu1 %vm95_vm0, %v2900_v16  ;;  %v2978_v41 = vld [vmem:[#allocation2 + $0x58] sm:$0xff]  ;;  %v2980_v42 = vld [vmem:[#allocation2 + $0x120] sm:$0xff]  ;;  %v2990_v44 = vld [vmem:[#allocation2 + $0x128] sm:$0xff] }
  0x33   :  { %2746 = vmatpush3.bf16.msra.mxu0 %v2743_v13  ;;  %2498 = vmatprep.mubr.msk.f32.mxu0 %vm95_vm0, %v2902_v17  ;;  %v2982_v43 = vld [vmem:[#allocation2 + $0x60] sm:$0xff]  ;;  %v2994_v45 = vld [vmem:[#allocation2 + $0x68] sm:$0xff]  ;;  %v2996_v46 = vld [vmem:[#allocation2 + $0x130] sm:$0xff] }
  0x34   :  { %2740 = vmatprep.subr.bf16.mxu1 %v2739_v22  ;;  %2748 = vmatprep.subr.bf16.mxu0 %v2747_v27  ;;  %v2998_v47 = vld [vmem:[#allocation2 + $0x70] sm:$0xff]  ;;  %v3006_v48 = vld [vmem:[#allocation2 + $0x138] sm:$0xff]  ;;  %v3012_v50 = vld [vmem:[#allocation2 + $0x140] sm:$0xff] }
  0x35   :  { %2535 = vmatmul.mubr.msk.f32.gmra.mrb[2].mxu1 %vm95_vm0, %v2910_v20  ;;  %2499 = vmatmul.mubr.msk.f32.gmra.mrb[2].mxu0 %vm95_vm0, %v2912_v21  ;;  %v3010_v49 = vld [vmem:[#allocation2 + $0x78] sm:$0xff]  ;;  %v3014_v51 = vld [vmem:[#allocation2 + $0x80] sm:$0xff]  ;;  %v3022_v52 = vld [vmem:[#allocation2 + $0x148] sm:$0xff] }
  0x36   :  { %2537 = vmatprep.mubr.msk.f32.mxu1 %vm95_vm0, %v2916_v24  ;;  %2501 = vmatprep.mubr.msk.f32.mxu0 %vm95_vm0, %v2918_v25  ;;  %v60_v53 = vld [vmem:[#allocation2 + $0x88] sm:$0xff]  ;;  %v3026_v54 = vld [vmem:[#allocation2 + $0x150] sm:$0xff]  ;;  %v3033_v56 = vld [vmem:[#allocation2 + $0x158] sm:$0xff] }
  0x37   :  { %2742 = vmatpush3.bf16.msra.mxu1 %v2739_v22  ;;  %2750 = vmatpush3.bf16.msra.mxu0 %v2747_v27  ;;  %v61_v55 = vld [vmem:[#allocation2 + $0x90] sm:$0xff]  ;;  %v62_v57 = vld [vmem:[#allocation2 + $0x98] sm:$0xff]  ;;  %v3036_v58 = vld [vmem:[#allocation2 + $0x160] sm:$0xff] }
  0x38   :  { %v63_v59 = vld [vmem:[#allocation2 + $0xa0] sm:$0xff]  ;;  %v3043_v60 = vld [vmem:[#allocation2 + $0x168] sm:$0xff]  ;;  %v3046_v62 = vld [vmem:[#allocation2 + $0x170] sm:$0xff] }
  0x39   :  { %2538 = vmatmul.mubr.msk.f32.gmra.mrb[4].mxu1 %vm95_vm0, %v2926_v28  ;;  %2502 = vmatmul.mubr.msk.f32.gmra.mrb[4].mxu0 %vm95_vm0, %v2930_v29  ;;  %v64_v61 = vld [vmem:[#allocation2 + $0xa8] sm:$0xff]  ;;  %v65_v63 = vld [vmem:[#allocation2 + $0xb0] sm:$0xff]  ;;  %v3053_v0 = vld [vmem:[#allocation2 + $0x178] sm:$0xff] }
  0x3a   :  { %2540 = vmatprep.mubr.msk.f32.mxu1 %vm95_vm0, %v2932_v30  ;;  %2504 = vmatprep.mubr.msk.f32.mxu0 %vm95_vm0, %v2934_v31  ;;  %v66_v1 = vld [vmem:[#allocation2 + $0xb8] sm:$0xff] }
  0x3d   :  { %2541 = vmatmul.mubr.msk.f32.gmra.mrb[6].mxu1 %vm95_vm0, %v2942_v32  ;;  %2505 = vmatmul.mubr.msk.f32.gmra.mrb[6].mxu0 %vm95_vm0, %v2946_v33 }
  0x3e   :  { %2543 = vmatprep.mubr.msk.f32.mxu1 %vm95_vm0, %v2948_v34  ;;  %2507 = vmatprep.mubr.msk.f32.mxu0 %vm95_vm0, %v2950_v35 }
  0x41   :  { %2544 = vmatmul.mubr.msk.f32.gmra.mrb[8].mxu1 %vm95_vm0, %v2958_v36  ;;  %2508 = vmatmul.mubr.msk.f32.gmra.mrb[8].mxu0 %vm95_vm0, %v2962_v37 }
  0x42   :  { %2546 = vmatprep.mubr.msk.f32.mxu1 %vm95_vm0, %v2964_v38  ;;  %2510 = vmatprep.mubr.msk.f32.mxu0 %vm95_vm0, %v2966_v39 }
  0x45   :  { %2547 = vmatmul.mubr.msk.f32.gmra.mrb[10].mxu1 %vm95_vm0, %v2974_v40  ;;  %2511 = vmatmul.mubr.msk.f32.gmra.mrb[10].mxu0 %vm95_vm0, %v2978_v41 }
  0x46   :  { %2549 = vmatprep.mubr.msk.f32.mxu1 %vm95_vm0, %v2980_v42  ;;  %2513 = vmatprep.mubr.msk.f32.mxu0 %vm95_vm0, %v2982_v43 }
  0x49   :  { %2550 = vmatmul.mubr.msk.f32.gmra.mrb[12].mxu1 %vm95_vm0, %v2990_v44  ;;  %2514 = vmatmul.mubr.msk.f32.gmra.mrb[12].mxu0 %vm95_vm0, %v2994_v45 }
  0x4a   :  { %2552 = vmatprep.mubr.msk.f32.mxu1 %vm95_vm0, %v2996_v46  ;;  %2516 = vmatprep.mubr.msk.f32.mxu0 %vm95_vm0, %v2998_v47 }
  0x4d   :  { %2553 = vmatmul.mubr.msk.f32.gmra.mrb[14].mxu1 %vm95_vm0, %v3006_v48  ;;  %2517 = vmatmul.mubr.msk.f32.gmra.mrb[14].mxu0 %vm95_vm0, %v3010_v49 }
  0x4e   :  { %2555 = vmatprep.mubr.msk.f32.mxu1 %vm95_vm0, %v3012_v50  ;;  %2519 = vmatprep.mubr.msk.f32.mxu0 %vm95_vm0, %v3014_v51 }
  0x51   :  { %2556 = vmatmul.mubr.msk.f32.gmra.mrb[16].mxu1 %vm95_vm0, %v3022_v52  ;;  %2520 = vmatmul.mubr.msk.f32.gmra.mrb[16].mxu0 %vm95_vm0, %v60_v53 }
  0x52   :  { %2558 = vmatprep.mubr.msk.f32.mxu1 %vm95_vm0, %v3026_v54  ;;  %2522 = vmatprep.mubr.msk.f32.mxu0 %vm95_vm0, %v61_v55 }
  0x55   :  { %2559 = vmatmul.mubr.msk.f32.gmra.mrb[18].mxu1 %vm95_vm0, %v3033_v56  ;;  %2523 = vmatmul.mubr.msk.f32.gmra.mrb[18].mxu0 %vm95_vm0, %v62_v57 }
  0x56   :  { %2561 = vmatprep.mubr.msk.f32.mxu1 %vm95_vm0, %v3036_v58  ;;  %2525 = vmatprep.mubr.msk.f32.mxu0 %vm95_vm0, %v63_v59 }
  0x59   :  { %2562 = vmatmul.mubr.msk.f32.gmra.mrb[20].mxu1 %vm95_vm0, %v3043_v60  ;;  %2526 = vmatmul.mubr.msk.f32.gmra.mrb[20].mxu0 %vm95_vm0, %v64_v61 }
  0x5a   :  { %2564 = vmatprep.mubr.msk.f32.mxu1 %vm95_vm0, %v3046_v62  ;;  %2528 = vmatprep.mubr.msk.f32.mxu0 %vm95_vm0, %v65_v63 }
  0x5d   :  { %2565 = vmatmul.mubr.msk.f32.gmra.mrb[22].mxu1 %vm95_vm0, %v3053_v0  ;;  %2529 = vmatmul.mubr.msk.f32.gmra.mrb[22].mxu0 %vm95_vm0, %v66_v1 }
  0x5e   :  { %2575 = vmatprep.mubr.msk.f32.mxu1 %vm95_vm0, %v2892_v9  ;;  %2655 = vmatprep.mubr.msk.f32.mxu0 %vm95_vm0, %v2892_v9 }
  0x61   :  { %2576 = vmatmul.mubr.msk.f32.vlgmr.msra.gmra.mrb[24].mxu1 %vm95_vm0, %v2898_v15  ;;  %2656 = vmatmul.mubr.msk.f32.vlgmr.msra.gmra.mrb[24].mxu0 %vm95_vm0, %v2898_v15 }
  0x62   :  { %2578 = vmatprep.mubr.msk.f32.mxu1 %vm95_vm0, %v2902_v17  ;;  %2658 = vmatprep.mubr.msk.f32.mxu0 %vm95_vm0, %v2902_v17 }
  0x65   :  { %2579 = vmatmul.mubr.msk.f32.gmra.mrb[26].mxu1 %vm95_vm0, %v2912_v21  ;;  %2659 = vmatmul.mubr.msk.f32.gmra.mrb[26].mxu0 %vm95_vm0, %v2912_v21 }
  0x66   :  { %2581 = vmatprep.mubr.msk.f32.mxu1 %vm95_vm0, %v2918_v25  ;;  %2661 = vmatprep.mubr.msk.f32.mxu0 %vm95_vm0, %v2918_v25 }
  0x69   :  { %2582 = vmatmul.mubr.msk.f32.gmra.mrb[28].mxu1 %vm95_vm0, %v2930_v29  ;;  %2662 = vmatmul.mubr.msk.f32.gmra.mrb[28].mxu0 %vm95_vm0, %v2930_v29 }
  0x6a   :  { %2584 = vmatprep.mubr.msk.f32.mxu1 %vm95_vm0, %v2934_v31  ;;  %2664 = vmatprep.mubr.msk.f32.mxu0 %vm95_vm0, %v2934_v31 }
  0x6d   :  { %2585 = vmatmul.mubr.msk.f32.gmra.mrb[30].mxu1 %vm95_vm0, %v2946_v33  ;;  %2665 = vmatmul.mubr.msk.f32.gmra.mrb[30].mxu0 %vm95_vm0, %v2946_v33 }
  0x6e   :  { %2587 = vmatprep.mubr.msk.f32.mxu1 %vm95_vm0, %v2950_v35  ;;  %2667 = vmatprep.mubr.msk.f32.mxu0 %vm95_vm0, %v2950_v35 }
  0x71   :  { %2588 = vmatmul.mubr.msk.f32.gmra.mrb[32].mxu1 %vm95_vm0, %v2962_v37  ;;  %2668 = vmatmul.mubr.msk.f32.gmra.mrb[32].mxu0 %vm95_vm0, %v2962_v37 }
  0x72   :  { %2590 = vmatprep.mubr.msk.f32.mxu1 %vm95_vm0, %v2966_v39  ;;  %2670 = vmatprep.mubr.msk.f32.mxu0 %vm95_vm0, %v2966_v39 }
  0x75   :  { %2591 = vmatmul.mubr.msk.f32.gmra.mrb[34].mxu1 %vm95_vm0, %v2978_v41  ;;  %2671 = vmatmul.mubr.msk.f32.gmra.mrb[34].mxu0 %vm95_vm0, %v2978_v41 }
  0x76   :  { %2593 = vmatprep.mubr.msk.f32.mxu1 %vm95_vm0, %v2982_v43  ;;  %2673 = vmatprep.mubr.msk.f32.mxu0 %vm95_vm0, %v2982_v43 }
  0x79   :  { %2594 = vmatmul.mubr.msk.f32.gmra.mrb[36].mxu1 %vm95_vm0, %v2994_v45  ;;  %2674 = vmatmul.mubr.msk.f32.gmra.mrb[36].mxu0 %vm95_vm0, %v2994_v45 }
  0x7a   :  { %2596 = vmatprep.mubr.msk.f32.mxu1 %vm95_vm0, %v2998_v47  ;;  %2676 = vmatprep.mubr.msk.f32.mxu0 %vm95_vm0, %v2998_v47 }
  0x7d   :  { %2597 = vmatmul.mubr.msk.f32.gmra.mrb[38].mxu1 %vm95_vm0, %v3010_v49  ;;  %2677 = vmatmul.mubr.msk.f32.gmra.mrb[38].mxu0 %vm95_vm0, %v3010_v49 }
  0x7e   :  { %2599 = vmatprep.mubr.msk.f32.mxu1 %vm95_vm0, %v3014_v51  ;;  %2679 = vmatprep.mubr.msk.f32.mxu0 %vm95_vm0, %v3014_v51 }
  0x81   :  { %2600 = vmatmul.mubr.msk.f32.gmra.mrb[40].mxu1 %vm95_vm0, %v60_v53  ;;  %2680 = vmatmul.mubr.msk.f32.gmra.mrb[40].mxu0 %vm95_vm0, %v60_v53 }
  0x82   :  { %2602 = vmatprep.mubr.msk.f32.mxu1 %vm95_vm0, %v61_v55  ;;  %2682 = vmatprep.mubr.msk.f32.mxu0 %vm95_vm0, %v61_v55 }
  0x85   :  { %2603 = vmatmul.mubr.msk.f32.gmra.mrb[42].mxu1 %vm95_vm0, %v62_v57  ;;  %2683 = vmatmul.mubr.msk.f32.gmra.mrb[42].mxu0 %vm95_vm0, %v62_v57 }
  0x86   :  { %2605 = vmatprep.mubr.msk.f32.mxu1 %vm95_vm0, %v63_v59  ;;  %2685 = vmatprep.mubr.msk.f32.mxu0 %vm95_vm0, %v63_v59 }
  0x89   :  { %2606 = vmatmul.mubr.msk.f32.gmra.mrb[44].mxu1 %vm95_vm0, %v64_v61  ;;  %2686 = vmatmul.mubr.msk.f32.gmra.mrb[44].mxu0 %vm95_vm0, %v64_v61 }
  0x8a   :  { %2608 = vmatprep.mubr.msk.f32.mxu1 %vm95_vm0, %v65_v63  ;;  %2688 = vmatprep.mubr.msk.f32.mxu0 %vm95_vm0, %v65_v63 }
  0x8d   :  { %2609 = vmatmul.mubr.msk.f32.gmra.mrb[46].mxu1 %vm95_vm0, %v66_v1  ;;  %2689 = vmatmul.mubr.msk.f32.gmra.mrb[46].mxu0 %vm95_vm0, %v66_v1 }
  0x8e   :  { %2611 = vmatprep.mubr.msk.f32.mxu1 %vm95_vm0, %v2888_v5  ;;  %2691 = vmatprep.mubr.msk.f32.mxu0 %vm95_vm0, %v2888_v5 }
  0x91   :  { %2612 = vmatmul.mubr.msk.f32.gmra.mrb[48].mxu1 %vm95_vm0, %v2896_v14  ;;  %2692 = vmatmul.mubr.msk.f32.gmra.mrb[48].mxu0 %vm95_vm0, %v2896_v14 }
  0x92   :  { %2614 = vmatprep.mubr.msk.f32.mxu1 %vm95_vm0, %v2900_v16  ;;  %2694 = vmatprep.mubr.msk.f32.mxu0 %vm95_vm0, %v2900_v16 }
  0x95   :  { %2615 = vmatmul.mubr.msk.f32.gmra.mrb[50].mxu1 %vm95_vm0, %v2910_v20  ;;  %2695 = vmatmul.mubr.msk.f32.gmra.mrb[50].mxu0 %vm95_vm0, %v2910_v20 }
  0x96   :  { %2617 = vmatprep.mubr.msk.f32.mxu1 %vm95_vm0, %v2916_v24  ;;  %2697 = vmatprep.mubr.msk.f32.mxu0 %vm95_vm0, %v2916_v24 }
  0x99   :  { %2618 = vmatmul.mubr.msk.f32.gmra.mrb[52].mxu1 %vm95_vm0, %v2926_v28  ;;  %2698 = vmatmul.mubr.msk.f32.gmra.mrb[52].mxu0 %vm95_vm0, %v2926_v28 }
  0x9a   :  { %2620 = vmatprep.mubr.msk.f32.mxu1 %vm95_vm0, %v2932_v30  ;;  %2700 = vmatprep.mubr.msk.f32.mxu0 %vm95_vm0, %v2932_v30 }
  0x9d   :  { %2621 = vmatmul.mubr.msk.f32.gmra.mrb[54].mxu1 %vm95_vm0, %v2942_v32  ;;  %2701 = vmatmul.mubr.msk.f32.gmra.mrb[54].mxu0 %vm95_vm0, %v2942_v32 }
  0x9e   :  { %2623 = vmatprep.mubr.msk.f32.mxu1 %vm95_vm0, %v2948_v34  ;;  %2703 = vmatprep.mubr.msk.f32.mxu0 %vm95_vm0, %v2948_v34 }
  0xa1   :  { %2624 = vmatmul.mubr.msk.f32.gmra.mrb[56].mxu1 %vm95_vm0, %v2958_v36  ;;  %2704 = vmatmul.mubr.msk.f32.gmra.mrb[56].mxu0 %vm95_vm0, %v2958_v36 }
  0xa2   :  { %2626 = vmatprep.mubr.msk.f32.mxu1 %vm95_vm0, %v2964_v38  ;;  %2706 = vmatprep.mubr.msk.f32.mxu0 %vm95_vm0, %v2964_v38 }
  0xa5   :  { %2627 = vmatmul.mubr.msk.f32.gmra.mrb[58].mxu1 %vm95_vm0, %v2974_v40  ;;  %2707 = vmatmul.mubr.msk.f32.gmra.mrb[58].mxu0 %vm95_vm0, %v2974_v40 }
  0xa6   :  { %2629 = vmatprep.mubr.msk.f32.mxu1 %vm95_vm0, %v2980_v42  ;;  %2709 = vmatprep.mubr.msk.f32.mxu0 %vm95_vm0, %v2980_v42 }
  0xa9   :  { %2630 = vmatmul.mubr.msk.f32.gmra.mrb[60].mxu1 %vm95_vm0, %v2990_v44  ;;  %2710 = vmatmul.mubr.msk.f32.gmra.mrb[60].mxu0 %vm95_vm0, %v2990_v44 }
  0xaa   :  { %2632 = vmatprep.mubr.msk.f32.mxu1 %vm95_vm0, %v2996_v46  ;;  %2712 = vmatprep.mubr.msk.f32.mxu0 %vm95_vm0, %v2996_v46 }
  0xad   :  { %2633 = vmatmul.mubr.msk.f32.gmra.mrb[62].mxu1 %vm95_vm0, %v3006_v48  ;;  %2713 = vmatmul.mubr.msk.f32.gmra.mrb[62].mxu0 %vm95_vm0, %v3006_v48 }
  0xae   :  { %2635 = vmatprep.mubr.msk.f32.mxu1 %vm95_vm0, %v3012_v50  ;;  %2715 = vmatprep.mubr.msk.f32.mxu0 %vm95_vm0, %v3012_v50 }
  0xb1   :  { %2636 = vmatmul.mubr.msk.f32.gmra.mrb[64].mxu1 %vm95_vm0, %v3022_v52  ;;  %2716 = vmatmul.mubr.msk.f32.gmra.mrb[64].mxu0 %vm95_vm0, %v3022_v52 }
  0xb2   :  { %2638 = vmatprep.mubr.msk.f32.mxu1 %vm95_vm0, %v3026_v54  ;;  %2718 = vmatprep.mubr.msk.f32.mxu0 %vm95_vm0, %v3026_v54 }
  0xb5   :  { %2639 = vmatmul.mubr.msk.f32.gmra.mrb[66].mxu1 %vm95_vm0, %v3033_v56  ;;  %2719 = vmatmul.mubr.msk.f32.gmra.mrb[66].mxu0 %vm95_vm0, %v3033_v56  ;;  %v3334_v56 = vld [vmem:[%s3930_s2] ss:$0 sm:$0xff] }
  0xb6   :  { %2641 = vmatprep.mubr.msk.f32.mxu1 %vm95_vm0, %v3036_v58  ;;  %2721 = vmatprep.mubr.msk.f32.mxu0 %vm95_vm0, %v3036_v58 }
  0xb9   :  { %2642 = vmatmul.mubr.msk.f32.gmra.mrb[68].mxu1 %vm95_vm0, %v3043_v60  ;;  %2722 = vmatmul.mubr.msk.f32.gmra.mrb[68].mxu0 %vm95_vm0, %v3043_v60 }
  0xba   :  { %2644 = vmatprep.mubr.msk.f32.mxu1 %vm95_vm0, %v3046_v62  ;;  %2724 = vmatprep.mubr.msk.f32.mxu0 %vm95_vm0, %v3046_v62 }
  0xbd   :  { %2645 = vmatmul.mubr.msk.f32.gmra.mrb[70].mxu1 %vm95_vm0, %v3053_v0  ;;  %2725 = vmatmul.mubr.msk.f32.gmra.mrb[70].mxu0 %vm95_vm0, %v3053_v0  ;;  %v1942_v0 = vlaneseq }
 0x104   :  { %v3237_v2 = vpop.f32.mrb[0].mxu1  ;;  %v2497_v3 = vpop.f32.mrb[0].mxu0 }
 0x105   :  { %v3239_v4 = vpop.f32.mrb[1].mxu1  ;;  %v3241_v5 = vpop.f32.mrb[1].mxu0 }
 0x108   :  { %v3243_v6 = vpop.f32.mrb[2].mxu1  ;;  %v3245_v7 = vpop.f32.mrb[2].mxu0 }
 0x109   :  { %v3247_v8 = vpop.f32.mrb[3].mxu1  ;;  %v3249_v9 = vpop.f32.mrb[3].mxu0 }
 0x10c   :  { %v3251_v10 = vpop.f32.mrb[4].mxu1  ;;  %v3253_v11 = vpop.f32.mrb[4].mxu0 }
 0x10d   :  { %v3255_v12 = vpop.f32.mrb[5].mxu1  ;;  %v3257_v13 = vpop.f32.mrb[5].mxu0 }
 0x110   :  { %v3259_v14 = vpop.f32.mrb[6].mxu1  ;;  %v3261_v15 = vpop.f32.mrb[6].mxu0 }
 0x111   :  { %v3263_v16 = vpop.f32.mrb[7].mxu1  ;;  %v3265_v17 = vpop.f32.mrb[7].mxu0 }
 0x114   :  { %v3267_v18 = vpop.f32.mrb[8].mxu1  ;;  %v3269_v19 = vpop.f32.mrb[8].mxu0 }
 0x115   :  { %v3271_v20 = vpop.f32.mrb[9].mxu1  ;;  %v3273_v21 = vpop.f32.mrb[9].mxu0 }
 0x118   :  { %v3275_v22 = vpop.f32.mrb[10].mxu1  ;;  %v3277_v23 = vpop.f32.mrb[10].mxu0 }
 0x119   :  { %3937 = vst [vmem:[#allocation11_spill] sm:$0xff] %v3275_v22  ;;  %v3279_v24 = vpop.f32.mrb[11].mxu1  ;;  %v3281_v25 = vpop.f32.mrb[11].mxu0 }
 0x11a   :  { %3938 = vst [vmem:[#allocation12_spill] sm:$0xff] %v3279_v24 }
 0x11c   :  { %v3283_v26 = vpop.f32.mrb[12].mxu1  ;;  %v3285_v27 = vpop.f32.mrb[12].mxu0 }
 0x11d   :  { %3939 = vst [vmem:[#allocation13_spill] sm:$0xff] %v3283_v26  ;;  %v3287_v28 = vpop.f32.mrb[13].mxu1  ;;  %v3289_v29 = vpop.f32.mrb[13].mxu0 }
 0x11e   :  { %3940 = vst [vmem:[#allocation14_spill] sm:$0xff] %v3287_v28 }
 0x120   :  { %v3291_v30 = vpop.f32.mrb[14].mxu1  ;;  %v3293_v31 = vpop.f32.mrb[14].mxu0 }
 0x121   :  { %3941 = vst [vmem:[#allocation15_spill] sm:$0xff] %v3291_v30  ;;  %v3295_v32 = vpop.f32.mrb[15].mxu1  ;;  %v3297_v33 = vpop.f32.mrb[15].mxu0 }
 0x122   :  { %3942 = vst [vmem:[#allocation16_spill] sm:$0xff] %v3295_v32 }
 0x124   :  { %v3299_v34 = vpop.f32.mrb[16].mxu1  ;;  %v3301_v35 = vpop.f32.mrb[16].mxu0 }
 0x125   :  { %3943 = vst [vmem:[#allocation17_spill] sm:$0xff] %v3299_v34  ;;  %v3303_v36 = vpop.f32.mrb[17].mxu1  ;;  %v3305_v37 = vpop.f32.mrb[17].mxu0 }
 0x126   :  { %3944 = vst [vmem:[#allocation18_spill] sm:$0xff] %v3303_v36 }
 0x128   :  { %v3307_v38 = vpop.f32.mrb[18].mxu1  ;;  %v3309_v39 = vpop.f32.mrb[18].mxu0 }
 0x129   :  { %3945 = vst [vmem:[#allocation19_spill] sm:$0xff] %v3307_v38  ;;  %v3311_v40 = vpop.f32.mrb[19].mxu1  ;;  %v3313_v41 = vpop.f32.mrb[19].mxu0 }
 0x12a   :  { %3946 = vst [vmem:[#allocation20_spill] sm:$0xff] %v3311_v40 }
 0x12c   :  { %v3315_v42 = vpop.f32.mrb[20].mxu1  ;;  %v3317_v43 = vpop.f32.mrb[20].mxu0 }
 0x12d   :  { %3947 = vst [vmem:[#allocation21_spill] sm:$0xff] %v3315_v42  ;;  %v3319_v44 = vpop.f32.mrb[21].mxu1  ;;  %v3321_v45 = vpop.f32.mrb[21].mxu0 }
 0x12e   :  { %3948 = vst [vmem:[#allocation22_spill] sm:$0xff] %v3319_v44 }
 0x130   :  { %v3323_v46 = vpop.f32.mrb[22].mxu1  ;;  %v3325_v47 = vpop.f32.mrb[22].mxu0 }
 0x131   :  { %3949 = vst [vmem:[#allocation23_spill] sm:$0xff] %v3323_v46  ;;  %v3327_v48 = vpop.f32.mrb[23].mxu1  ;;  %v3329_v49 = vpop.f32.mrb[23].mxu0 }
 0x132   :  { %3950 = vst [vmem:[#allocation24_spill] sm:$0xff] %v3327_v48 }
 0x134   :  { %v2577_v50 = vpop.f32.mrb[24].mxu1  ;;  %v2657_v51 = vpop.f32.mrb[24].mxu0 }
 0x135   :  { %v1216_v52 = vrot.slane %v2577_v50, 1  ;;  %v616_v53 = vpop.f32.mrb[25].mxu1  ;;  %v1433_v54 = vrot.slane %v2657_v51, 2  ;;  %v926_v55 = vpop.f32.mrb[25].mxu0 }
 0x136   :  { %v1215_v57 = vrot.slane %v616_v53, 1  ;;  %v1432_v58 = vrot.slane %v926_v55, 2 }
 0x137   :  { %v1336_v59 = vadd.f32 %v2497_v3, %v1216_v52 }
 0x138   :  { %v1217_v60 = vsel %vm1214_vm1, %v1215_v57, %v1216_v52  ;;  %v1434_v61 = vsel %vm1431_vm2, %v1432_v58, %v1433_v54  ;;  %v2580_v62 = vpop.f32.mrb[26].mxu1  ;;  %v2660_v63 = vpop.f32.mrb[26].mxu0 }
 0x139   :  { %v1894_v1 = vadd.f32 %v3334_v56, %v1336_v59  ;;  %v1335_v50 = vadd.f32 %v1217_v60, %v3241_v5  ;;  %v1553_v51 = vadd.f32 %v1433_v54, %v1336_v59  ;;  %v1219_v48 = vrot.slane %v2580_v62, 1  ;;  %v626_v46 = vpop.f32.mrb[27].mxu1  ;;  %v936_v44 = vpop.f32.mrb[27].mxu0 }
 0x13a   :  { %v1218_v42 = vrot.slane %v626_v46, 1  ;;  %v1436_v40 = vrot.slane %v2660_v63, 2  ;;  %v1435_v53 = vrot.slane %v936_v44, 2  ;;  %v3344_v54 = vand.u32 127, %v1942_v0 }
 0x13b   :  { %v1918_v55 = vmax.f32 %v1894_v1, 0.0  ;;  %v1607_v3 = vadd.f32 %v3334_v56, %v1553_v51  ;;  %v1552_v52 = vadd.f32 %v1434_v61, %v1335_v50  ;;  %v1338_v57 = vadd.f32 %v3245_v7, %v1219_v48 }
 0x13c   :  { %v1220_v58 = vsel %vm1214_vm1, %v1218_v42, %v1219_v48  ;;  %v1437_v38 = vsel %vm1431_vm2, %v1435_v53, %v1436_v40  ;;  %v2583_v36 = vpop.f32.mrb[28].mxu1  ;;  %v2663_v5 = vpop.f32.mrb[28].mxu0  ;;  %vm1944_vm10 = vcmp.lt.s32.totalorder %v3344_v54, 64 }
 0x13d   :  { %v1969_v59 = vrot.slane %v1918_v55, 6  ;;  %v1655_v60 = vmax.f32 %v1607_v3, 0.0  ;;  %v1606_v46 = vadd.f32 %v3334_v56, %v1552_v52  ;;  %v1895_v44 = vadd.f32 %v3334_v56, %v1338_v57  ;;  %v636_v62 = vpop.f32.mrb[29].mxu1  ;;  %v946_v61 = vpop.f32.mrb[29].mxu0 }
 0x13e   :  { %v1337_v7 = vadd.f32 %v1220_v58, %v3249_v9  ;;  %v1555_v63 = vadd.f32 %v1436_v40, %v1338_v57  ;;  %v1222_v1 = vrot.slane %v2583_v36, 1  ;;  %v1221_v42 = vrot.slane %v636_v62, 1 }
 0x13f   :  { %v1702_v48 = vsel %vm1431_vm2, %v1655_v60, -inf  ;;  %v1654_v50 = vmax.f32 %v1606_v46, 0.0  ;;  %v1919_v51 = vmax.f32 %v1895_v44, 0.0  ;;  %v1439_v0 = vrot.slane %v2663_v5, 2 }
 0x140   :  { %v1609_v53 = vadd.f32 %v3334_v56, %v1555_v63  ;;  %v1554_v55 = vadd.f32 %v1437_v38, %v1337_v7  ;;  %v1340_v3 = vadd.f32 %v3253_v11, %v1222_v1  ;;  %v1223_v52 = vsel %vm1214_vm1, %v1221_v42, %v1222_v1  ;;  %v2586_v34 = vpop.f32.mrb[30].mxu1  ;;  %v2666_v32 = vpop.f32.mrb[30].mxu0 }
 0x141   :  { %v1703_v30 = vmax.f32 %v1654_v50, %v1702_v48  ;;  %v1970_v28 = vrot.slane %v1919_v51, 5  ;;  %v1339_v9 = vadd.f32 %v1223_v52, %v3257_v13  ;;  %v1438_v36 = vrot.slane %v946_v61, 2  ;;  %v646_v40 = vpop.f32.mrb[31].mxu1  ;;  %v956_v57 = vpop.f32.mrb[31].mxu0 }
 0x142   :  { %v1657_v58 = vmax.f32 %v1609_v53, 0.0  ;;  %v1608_v60 = vadd.f32 %v3334_v56, %v1554_v55  ;;  %v1896_v5 = vadd.f32 %v3334_v56, %v1340_v3  ;;  %v1557_v46 = vadd.f32 %v1439_v0, %v1340_v3 }
 0x143   :  { %v1704_v38 = vrot.slane %v1703_v30, 4  ;;  %v1972_v11 = vsel %vm1971_vm3, %v1970_v28, %v1969_v59  ;;  %v1440_v44 = vsel %vm1431_vm2, %v1438_v36, %v1439_v0  ;;  %v1225_v62 = vrot.slane %v2586_v34, 1 }
 0x144   :  { %v1710_v7 = vsel %vm1431_vm2, %v1657_v58, -inf  ;;  %v1656_v63 = vmax.f32 %v1608_v60, 0.0  ;;  %v1920_v13 = vmax.f32 %v1896_v5, 0.0  ;;  %v1611_v61 = vadd.f32 %v3334_v56, %v1557_v46  ;;  %v2589_v1 = vpop.f32.mrb[32].mxu1  ;;  %v3360_v42 = vpop.f32.mrb[32].mxu0 }
 0x145   :  { %v1705_v48 = vmax.f32 %v1703_v30, %v1704_v38  ;;  %v1556_v50 = vadd.f32 %v1440_v44, %v1339_v9  ;;  %v1342_v51 = vadd.f32 %v3261_v15, %v1225_v62  ;;  %v1224_v53 = vrot.slane %v646_v40, 1  ;;  %v656_v55 = vpop.f32.mrb[33].mxu1  ;;  %v966_v3 = vpop.f32.mrb[33].mxu0 }
 0x146   :  { %v1711_v28 = vmax.f32 %v1656_v63, %v1710_v7  ;;  %v1973_v59 = vrot.slane %v1920_v13, 4  ;;  %v1659_v0 = vmax.f32 %v1611_v61, 0.0  ;;  %v1442_v34 = vrot.slane %v2666_v32, 2 }
 0x147   :  { %v1706_v52 = vrot.slane %v1705_v48, 2  ;;  %v1610_v36 = vadd.f32 %v3334_v56, %v1556_v50  ;;  %v1897_v58 = vadd.f32 %v3334_v56, %v1342_v51  ;;  %v1226_v60 = vsel %vm1214_vm1, %v1224_v53, %v1225_v62 }
 0x148   :  { %v1712_v5 = vrot.slane %v1711_v28, 4  ;;  %v1975_v30 = vsel %vm1974_vm4, %v1973_v59, %v1972_v11  ;;  %v1718_v9 = vsel %vm1431_vm2, %v1659_v0, -inf  ;;  %v1341_v15 = vadd.f32 %v1226_v60, %v3265_v17  ;;  %v2592_v40 = vpop.f32.mrb[34].mxu1  ;;  %v3369_v46 = vpop.f32.mrb[34].mxu0 }
 0x149   :  { %v1707_v38 = vmax.f32 %v1705_v48, %v1706_v52  ;;  %v1658_v44 = vmax.f32 %v1610_v36, 0.0  ;;  %v1921_v32 = vmax.f32 %v1897_v58, 0.0  ;;  %v1559_v7 = vadd.f32 %v1442_v34, %v1342_v51  ;;  %v666_v63 = vpop.f32.mrb[35].mxu1  ;;  %v3371_v13 = vpop.f32.mrb[35].mxu0 }
 0x14a   :  { %v1713_v61 = vmax.f32 %v1711_v28, %v1712_v5  ;;  %v1441_v62 = vrot.slane %v956_v57, 2  ;;  %v1228_v50 = vrot.slane %v2589_v1, 1  ;;  %v1227_v53 = vrot.slane %v656_v55, 1 }
 0x14b   :  { %v1708_v11 = vrot.slane %v1707_v38, 1  ;;  %v1719_v59 = vmax.f32 %v1658_v44, %v1718_v9  ;;  %v1976_v0 = vrot.slane %v1921_v32, 3  ;;  %v1613_v17 = vadd.f32 %v3334_v56, %v1559_v7 }
 0x14c   :  { %v1714_v60 = vrot.slane %v1713_v61, 2  ;;  %v1443_v26 = vsel %vm1431_vm2, %v1441_v62, %v1442_v34  ;;  %v1344_v48 = vadd.f32 %v3269_v19, %v1228_v50  ;;  %v1229_v51 = vsel %vm1214_vm1, %v1227_v53, %v1228_v50  ;;  %v3377_v52 = vpop.f32.mrb[36].mxu1  ;;  %v3379_v36 = vpop.f32.mrb[36].mxu0 }
 0x14d   :  { %v3381_v28 = vmax.f32 %v1707_v38, %v1708_v11  ;;  %v1720_v57 = vrot.slane %v1719_v59, 4  ;;  %v1978_v1 = vsel %vm1977_vm5, %v1976_v0, %v1975_v30  ;;  %v1661_v55 = vmax.f32 %v1613_v17, 0.0  ;;  %v3384_v58 = vpop.f32.mrb[37].mxu1  ;;  %v3386_v5 = vpop.f32.mrb[37].mxu0 }
 0x14e   :  { %v1715_v9 = vmax.f32 %v1713_v61, %v1714_v60  ;;  %v1558_v34 = vadd.f32 %v1443_v26, %v1341_v15  ;;  %v1898_v19 = vadd.f32 %v3334_v56, %v1344_v48  ;;  %v1343_v44 = vadd.f32 %v1229_v51, %v3273_v21 }
 0x14f   :  { %3951 = vst [vmem:[#allocation25_spill] sm:$0xff] %v3381_v28  ;;  %v1721_v32 = vmax.f32 %v1719_v59, %v1720_v57  ;;  %v1726_v7 = vsel %vm1431_vm2, %v1661_v55, -inf  ;;  %v1445_v38 = vrot.slane %v3360_v42, 2  ;;  %v1444_v62 = vrot.slane %v966_v3, 2 }
 0x150   :  { %v1716_v50 = vrot.slane %v1715_v9, 1  ;;  %v1612_v30 = vadd.f32 %v3334_v56, %v1558_v34  ;;  %v1922_v53 = vmax.f32 %v1898_v19, 0.0  ;;  %v1231_v11 = vrot.slane %v2592_v40, 1  ;;  %v3393_v0 = vpop.f32.mrb[38].mxu1  ;;  %v3395_v61 = vpop.f32.mrb[38].mxu0 }
 0x151   :  { %v1722_v26 = vrot.slane %v1721_v32, 2  ;;  %v1561_v15 = vadd.f32 %v1445_v38, %v1344_v48  ;;  %v1446_v21 = vsel %vm1431_vm2, %v1444_v62, %v1445_v38  ;;  %v1230_v59 = vrot.slane %v666_v63, 1  ;;  %v3398_v17 = vpop.f32.mrb[39].mxu1  ;;  %v3400_v60 = vpop.f32.mrb[39].mxu0 }
 0x152   :  { %v3402_v42 = vmax.f32 %v1715_v9, %v1716_v50  ;;  %v1660_v3 = vmax.f32 %v1612_v30, 0.0  ;;  %v1979_v51 = vrot.slane %v1922_v53, 2  ;;  %v1560_v57 = vadd.f32 %v1446_v21, %v1343_v44 }
 0x153   :  { %v1723_v40 = vmax.f32 %v1721_v32, %v1722_v26  ;;  %v1615_v55 = vadd.f32 %v3334_v56, %v1561_v15  ;;  %v1346_v34 = vadd.f32 %v3277_v23, %v1231_v11  ;;  %v1232_v19 = vsel %vm1214_vm1, %v1230_v59, %v1231_v11 }
 0x154   :  { %3952 = vst [vmem:[#allocation26_spill] sm:$0xff] %v3402_v42  ;;  %v1727_v48 = vmax.f32 %v1660_v3, %v1726_v7  ;;  %v1981_v63 = vsel %vm1980_vm6, %v1979_v51, %v1978_v1  ;;  %v1614_v38 = vadd.f32 %v3334_v56, %v1560_v57  ;;  %v1345_v62 = vadd.f32 %v1232_v19, %v3281_v25  ;;  %v3410_v9 = vpop.f32.mrb[40].mxu1  ;;  %v3412_v50 = vpop.f32.mrb[40].mxu0 }
 0x155   :  { %v1724_v44 = vrot.slane %v1723_v40, 1  ;;  %v1663_v32 = vmax.f32 %v1615_v55, 0.0  ;;  %v1899_v30 = vadd.f32 %v3334_v56, %v1346_v34  ;;  %v1448_v23 = vrot.slane %v3369_v46, 2  ;;  %v3416_v53 = vpop.f32.mrb[41].mxu1  ;;  %v3418_v11 = vpop.f32.mrb[41].mxu0 }
 0x156   :  { %v1728_v7 = vrot.slane %v1727_v48, 4  ;;  %v1662_v1 = vmax.f32 %v1614_v38, 0.0  ;;  %v1447_v26 = vrot.slane %v3371_v13, 2  ;;  %v1234_v25 = vrot.slane %v3377_v52, 1 }
 0x157   :  { %v3422_v15 = vmax.f32 %v1723_v40, %v1724_v44  ;;  %v1734_v21 = vsel %vm1431_vm2, %v1663_v32, -inf  ;;  %v1923_v59 = vmax.f32 %v1899_v30, 0.0  ;;  %v1563_v3 = vadd.f32 %v1448_v23, %v1346_v34 }
 0x158   :  { %v1729_v51 = vmax.f32 %v1727_v48, %v1728_v7  ;;  %v1735_v57 = vmax.f32 %v1662_v1, %v1734_v21  ;;  %v1449_v46 = vsel %vm1431_vm2, %v1447_v26, %v1448_v23  ;;  %v1348_v55 = vadd.f32 %v3285_v27, %v1234_v25  ;;  %v3427_v19 = vpop.f32.mrb[42].mxu1  ;;  %v3429_v42 = vpop.f32.mrb[42].mxu0 }
 0x159   :  { %3953 = vst [vmem:[#allocation27_spill] sm:$0xff] %v3422_v15  ;;  %v1982_v38 = vrot.slane %v1923_v59, 1  ;;  %v1617_v13 = vadd.f32 %v3334_v56, %v1563_v3  ;;  %v1562_v52 = vadd.f32 %v1449_v46, %v1345_v62  ;;  %v1233_v40 = vrot.slane %v3384_v58, 1  ;;  %v3433_v44 = vpop.f32.mrb[43].mxu1  ;;  %v3435_v32 = vpop.f32.mrb[43].mxu0 }
 0x15a   :  { %v1730_v34 = vrot.slane %v1729_v51, 2  ;;  %v1736_v48 = vrot.slane %v1735_v57, 4  ;;  %v1900_v30 = vadd.f32 %v3334_v56, %v1348_v55  ;;  %v1451_v27 = vrot.slane %v3379_v36, 2 }
 0x15b   :  { %v1984_v23 = vsel %vm1983_vm7, %v1982_v38, %v1981_v63  ;;  %v1665_v7 = vmax.f32 %v1617_v13, 0.0  ;;  %v1616_v1 = vadd.f32 %v3334_v56, %v1562_v52  ;;  %v1235_v26 = vsel %vm1214_vm1, %v1233_v40, %v1234_v25 }
 0x15c   :  { %v1731_v62 = vmax.f32 %v1729_v51, %v1730_v34  ;;  %v1737_v21 = vmax.f32 %v1735_v57, %v1736_v48  ;;  %v1924_v58 = vmax.f32 %v1900_v30, 0.0  ;;  %v1347_v59 = vadd.f32 %v1235_v26, %v3289_v29  ;;  %v3443_v3 = vpop.f32.mrb[44].mxu1  ;;  %v3445_v46 = vpop.f32.mrb[44].mxu0 }
 0x15d   :  { %v1742_v15 = vsel %vm1431_vm2, %v1665_v7, -inf  ;;  %v1664_v28 = vmax.f32 %v1616_v1, 0.0  ;;  %v1565_v36 = vadd.f32 %v1451_v27, %v1348_v55  ;;  %v1450_v63 = vrot.slane %v3386_v5, 2  ;;  %v3449_v38 = vpop.f32.mrb[45].mxu1  ;;  %v3451_v13 = vpop.f32.mrb[45].mxu0 }
 0x15e   :  { %v1732_v25 = vrot.slane %v1731_v62, 1  ;;  %v1738_v51 = vrot.slane %v1737_v21, 2  ;;  %v1986_v57 = vsel %vm1985_vm8, %v1924_v58, %v1984_v23  ;;  %v1237_v29 = vrot.slane %v3393_v0, 1 }
 0x15f   :  { %v1743_v52 = vmax.f32 %v1664_v28, %v1742_v15  ;;  %v1619_v40 = vadd.f32 %v3334_v56, %v1565_v36  ;;  %v1452_v55 = vsel %vm1431_vm2, %v1450_v63, %v1451_v27  ;;  %v1236_v5 = vrot.slane %v3398_v17, 1 }
 0x160   :  { %v3459_v34 = vmax.f32 %v1731_v62, %v1732_v25  ;;  %v1739_v48 = vmax.f32 %v1737_v21, %v1738_v51  ;;  %v1564_v30 = vadd.f32 %v1452_v55, %v1347_v59  ;;  %v1350_v7 = vadd.f32 %v3293_v31, %v1237_v29  ;;  %v3462_v1 = vpop.f32.mrb[46].mxu1  ;;  %v3464_v23 = vpop.f32.mrb[46].mxu0 }
 0x161   :  { %v1744_v0 = vrot.slane %v1743_v52, 4  ;;  %v1667_v26 = vmax.f32 %v1619_v40, 0.0  ;;  %v1238_v28 = vsel %vm1214_vm1, %v1236_v5, %v1237_v29  ;;  %v1454_v15 = vrot.slane %v3395_v61, 2  ;;  %v3468_v58 = vpop.f32.mrb[47].mxu1  ;;  %v3470_v27 = vpop.f32.mrb[47].mxu0 }
 0x162   :  { %3954 = vst [vmem:[#allocation28_spill] sm:$0xff] %v3459_v34  ;;  %v1740_v17 = vrot.slane %v1739_v48, 1  ;;  %v1618_v62 = vadd.f32 %v3334_v56, %v1564_v30  ;;  %v1901_v21 = vadd.f32 %v3334_v56, %v1350_v7  ;;  %v1349_v31 = vadd.f32 %v1238_v28, %v3297_v33 }
 0x163   :  { %v1745_v59 = vmax.f32 %v1743_v52, %v1744_v0  ;;  %v1750_v36 = vsel %vm1431_vm2, %v1667_v26, -inf  ;;  %v1567_v63 = vadd.f32 %v1454_v15, %v1350_v7  ;;  %v1453_v25 = vrot.slane %v3400_v60, 2 }
 0x164   :  { %v3477_v51 = vmax.f32 %v1739_v48, %v1740_v17  ;;  %v1666_v61 = vmax.f32 %v1618_v62, 0.0  ;;  %v1925_v29 = vmax.f32 %v1901_v21, 0.0  ;;  %v1240_v40 = vrot.slane %v3410_v9, 1  ;;  %v3480_v55 = vpop.f32.mrb[48].mxu1  ;;  %v3482_v5 = vpop.f32.mrb[48].mxu0 }
 0x165   :  { %v1746_v30 = vrot.slane %v1745_v59, 2  ;;  %v1621_v34 = vadd.f32 %v3334_v56, %v1567_v63  ;;  %v1455_v33 = vsel %vm1431_vm2, %v1453_v25, %v1454_v15  ;;  %v1239_v52 = vrot.slane %v3416_v53, 1  ;;  %v3487_v7 = vpop.f32.mrb[49].mxu1  ;;  %v3489_v60 = vpop.f32.mrb[49].mxu0 }
 0x166   :  { %3955 = vst [vmem:[#allocation29_spill] sm:$0xff] %v3477_v51  ;;  %v1751_v48 = vmax.f32 %v1666_v61, %v1750_v36  ;;  %v1987_v0 = vrot.slane %v1925_v29, 7  ;;  %v1566_v26 = vadd.f32 %v1455_v33, %v1349_v31  ;;  %v1352_v9 = vadd.f32 %v3301_v35, %v1240_v40 }
 0x167   :  { %v1747_v28 = vmax.f32 %v1745_v59, %v1746_v30  ;;  %v1669_v17 = vmax.f32 %v1621_v34, 0.0  ;;  %v1241_v62 = vsel %vm1214_vm1, %v1239_v52, %v1240_v40  ;;  %v1457_v21 = vrot.slane %v3412_v50, 2 }
 0x168   :  { %v1752_v63 = vrot.slane %v1751_v48, 4  ;;  %v1989_v15 = vsel %vm1988_vm9, %v1987_v0, %v1986_v57  ;;  %v1620_v53 = vadd.f32 %v3334_v56, %v1566_v26  ;;  %v1902_v25 = vadd.f32 %v3334_v56, %v1352_v9  ;;  %v3497_v51 = vpop.f32.mrb[50].mxu1  ;;  %v3499_v36 = vpop.f32.mrb[50].mxu0 }
 0x169   :  { %v1748_v31 = vrot.slane %v1747_v28, 1  ;;  %v3503_v35 = vsel %vm1944_vm10, %v1989_v15, 0.0  ;;  %v1758_v34 = vsel %vm1431_vm2, %v1669_v17, -inf  ;;  %v1351_v50 = vadd.f32 %v1241_v62, %v3305_v37  ;;  %v3507_v59 = vpop.f32.mrb[51].mxu1  ;;  %v3509_v57 = vpop.f32.mrb[51].mxu0 }
 0x16a   :  { %3956 = vst [vmem:[#allocation30_spill] sm:$0xff] %v3503_v35  ;;  %v1753_v61 = vmax.f32 %v1751_v48, %v1752_v63  ;;  %v1668_v40 = vmax.f32 %v1620_v53, 0.0  ;;  %v1926_v30 = vmax.f32 %v1902_v25, 0.0  ;;  %v1569_v52 = vadd.f32 %v1457_v21, %v1352_v9 }
 0x16b   :  { %v3512_v33 = vmax.f32 %v1747_v28, %v1748_v31  ;;  %v1456_v0 = vrot.slane %v3418_v11, 2  ;;  %v1243_v26 = vrot.slane %v3427_v19, 1  ;;  %v1242_v37 = vrot.slane %v3433_v44, 1 }
 0x16c   :  { %v1754_v15 = vrot.slane %v1753_v61, 2  ;;  %v1759_v17 = vmax.f32 %v1668_v40, %v1758_v34  ;;  %v1990_v24 = vrot.slane %v1926_v30, 6  ;;  %v3517_v62 = vpop.f32.mrb[52].mxu1  ;;  %v3519_v22 = vpop.f32.mrb[52].mxu0  ;;  %v1623_v48 = vadd.f32 %v3334_v56, %v1569_v52 }
 0x16d   :  { %3957 = vst [vmem:[#allocation31_spill] sm:$0xff] %v3512_v33  ;;  %v1458_v63 = vsel %vm1431_vm2, %v1456_v0, %v1457_v21  ;;  %v1354_v28 = vadd.f32 %v3309_v39, %v1243_v26  ;;  %v1460_v9 = vrot.slane %v3429_v42, 2  ;;  %v3525_v11 = vpop.f32.mrb[53].mxu1  ;;  %v3527_v19 = vpop.f32.mrb[53].mxu0  ;;  %v1244_v31 = vsel %vm1214_vm1, %v1242_v37, %v1243_v26 }
 0x16e   :  { %v3529_v53 = vmax.f32 %v1753_v61, %v1754_v15  ;;  %v1760_v25 = vrot.slane %v1759_v17, 4  ;;  %v1568_v44 = vadd.f32 %v1458_v63, %v1351_v50  ;;  %v1671_v34 = vmax.f32 %v1623_v48, 0.0 }
 0x16f   :  { %v1903_v40 = vadd.f32 %v3334_v56, %v1354_v28  ;;  %v1353_v30 = vadd.f32 %v1244_v31, %v3313_v41  ;;  %v1571_v21 = vadd.f32 %v1460_v9, %v1354_v28  ;;  %v1459_v0 = vrot.slane %v3435_v32, 2 }
 0x170   :  { %3958 = vst [vmem:[#allocation32_spill] sm:$0xff] %v3529_v53  ;;  %v1761_v52 = vmax.f32 %v1759_v17, %v1760_v25  ;;  %v1622_v42 = vadd.f32 %v3334_v56, %v1568_v44  ;;  %v3537_v29 = vpop.f32.mrb[54].mxu1  ;;  %v3539_v61 = vpop.f32.mrb[54].mxu0  ;;  %v1766_v50 = vsel %vm1431_vm2, %v1671_v34, -inf  ;;  %v1246_v37 = vrot.slane %v3443_v3, 1 }
 0x171   :  { %v1927_v26 = vmax.f32 %v1903_v40, 0.0  ;;  %v1625_v15 = vadd.f32 %v3334_v56, %v1571_v21  ;;  %v3544_v41 = vpop.f32.mrb[55].mxu1  ;;  %v3546_v48 = vpop.f32.mrb[55].mxu0  ;;  %v1461_v28 = vsel %vm1431_vm2, %v1459_v0, %v1460_v9  ;;  %v1245_v32 = vrot.slane %v3449_v38, 1 }
 0x172   :  { %v1762_v17 = vrot.slane %v1761_v52, 2  ;;  %v1670_v63 = vmax.f32 %v1622_v42, 0.0  ;;  %v1570_v31 = vadd.f32 %v1461_v28, %v1353_v30  ;;  %v1356_v34 = vadd.f32 %v3317_v43, %v1246_v37 }
 0x173   :  { %v1991_v25 = vrot.slane %v1927_v26, 5  ;;  %v1673_v44 = vmax.f32 %v1625_v15, 0.0  ;;  %v1247_v3 = vsel %vm1214_vm1, %v1245_v32, %v1246_v37  ;;  %v1463_v39 = vrot.slane %v3445_v46, 2 }
 0x174   :  { %v3551_v40 = vmax.f32 %v1761_v52, %v1762_v17  ;;  %v1767_v21 = vmax.f32 %v1670_v63, %v1766_v50  ;;  %v3555_v33 = vpop.f32.mrb[56].mxu1  ;;  %v3557_v35 = vpop.f32.mrb[56].mxu0  ;;  %v1624_v42 = vadd.f32 %v3334_v56, %v1570_v31  ;;  %v1904_v30 = vadd.f32 %v3334_v56, %v1356_v34 }
 0x175   :  { %v1992_v9 = vsel %vm1971_vm3, %v1991_v25, %v1990_v24  ;;  %v1774_v38 = vsel %vm1431_vm2, %v1673_v44, -inf  ;;  %v3563_v43 = vpop.f32.mrb[57].mxu1  ;;  %v3565_v52 = vpop.f32.mrb[57].mxu0  ;;  %v1355_v50 = vadd.f32 %v1247_v3, %v3321_v45  ;;  %v1573_v46 = vadd.f32 %v1463_v39, %v1356_v34 }
 0x176   :  { %3959 = vst [vmem:[#allocation33_spill] sm:$0xff] %v3551_v40  ;;  %v1768_v0 = vrot.slane %v1767_v21, 4  ;;  %v1462_v26 = vrot.slane %v3451_v13, 2  ;;  %v1672_v15 = vmax.f32 %v1624_v42, 0.0  ;;  %v1928_v37 = vmax.f32 %v1904_v30, 0.0 }
 0x177   :  { %v1249_v24 = vrot.slane %v3462_v1, 1  ;;  %v1248_v17 = vrot.slane %v3468_v58, 1  ;;  %v1627_v28 = vadd.f32 %v3334_v56, %v1573_v46  ;;  %v1466_v25 = vrot.slane %v3464_v23, 2 }
 0x178   :  { %v1769_v63 = vmax.f32 %v1767_v21, %v1768_v0  ;;  %v1464_v32 = vsel %vm1431_vm2, %v1462_v26, %v1463_v39  ;;  %v3574_v44 = vpop.f32.mrb[58].mxu1  ;;  %v3576_v31 = vpop.f32.mrb[58].mxu0  ;;  %v1775_v45 = vmax.f32 %v1672_v15, %v1774_v38  ;;  %v1993_v34 = vrot.slane %v1928_v37, 4 }
 0x179   :  { %v1572_v13 = vadd.f32 %v1464_v32, %v1355_v50  ;;  %v1358_v3 = vadd.f32 %v3325_v47, %v1249_v24  ;;  %v3579_v42 = vpop.f32.mrb[59].mxu1  ;;  %v3581_v1 = vpop.f32.mrb[59].mxu0  ;;  %v1675_v21 = vmax.f32 %v1627_v28, 0.0  ;;  %v1250_v30 = vsel %vm1214_vm1, %v1248_v17, %v1249_v24 }
 0x17a   :  { %v1770_v58 = vrot.slane %v1769_v63, 2  ;;  %v1465_v39 = vrot.slane %v3470_v27, 2  ;;  %v1776_v23 = vrot.slane %v1775_v45, 4  ;;  %v1994_v0 = vsel %vm1974_vm4, %v1993_v34, %v1992_v9 }
 0x17b   :  { %v1626_v46 = vadd.f32 %v3334_v56, %v1572_v13  ;;  %v1905_v38 = vadd.f32 %v3334_v56, %v1358_v3  ;;  %v1782_v47 = vsel %vm1431_vm2, %v1675_v21, -inf  ;;  %v1357_v26 = vadd.f32 %v1250_v30, %v3329_v49 }
 0x17c   :  { %v1771_v50 = vmax.f32 %v1769_v63, %v1770_v58  ;;  %v1575_v15 = vadd.f32 %v1466_v25, %v1358_v3  ;;  %v3590_v37 = vpop.f32.mrb[60].mxu1  ;;  %v3592_v28 = vpop.f32.mrb[60].mxu0  ;;  %v1777_v24 = vmax.f32 %v1775_v45, %v1776_v23  ;;  %v1467_v32 = vsel %vm1431_vm2, %v1465_v39, %v1466_v25 }
 0x17d   :  { %v1674_v17 = vmax.f32 %v1626_v46, 0.0  ;;  %v1929_v27 = vmax.f32 %v1905_v38, 0.0  ;;  %v3595_v9 = vpop.f32.mrb[61].mxu1  ;;  %v3597_v34 = vpop.f32.mrb[61].mxu0  ;;  %v1574_v58 = vadd.f32 %v1467_v32, %v1357_v26  ;;  %v1252_v49 = vrot.slane %v3480_v55, 1 }
 0x17e   :  { %v1772_v13 = vrot.slane %v1771_v50, 1  ;;  %v1629_v63 = vadd.f32 %v3334_v56, %v1575_v15  ;;  %v1778_v3 = vrot.slane %v1777_v24, 2  ;;  %v1251_v40 = vrot.slane %v3487_v7, 1 }
 0x17f   :  { %v1783_v21 = vmax.f32 %v1674_v17, %v1782_v47  ;;  %v1995_v30 = vrot.slane %v1929_v27, 3  ;;  %v1628_v25 = vadd.f32 %v3334_v56, %v1574_v58  ;;  %v1360_v39 = vadd.f32 %v3237_v2, %v1252_v49 }
 0x180   :  { %v3602_v45 = vmax.f32 %v1771_v50, %v1772_v13  ;;  %v1677_v23 = vmax.f32 %v1629_v63, 0.0  ;;  %v3606_v46 = vpop.f32.mrb[62].mxu1  ;;  %v3608_v38 = vpop.f32.mrb[62].mxu0  ;;  %v1779_v15 = vmax.f32 %v1777_v24, %v1778_v3  ;;  %v1253_v47 = vsel %vm1214_vm1, %v1251_v40, %v1252_v49 }
 0x181   :  { %v1784_v26 = vrot.slane %v1783_v21, 4  ;;  %v1996_v55 = vsel %vm1977_vm5, %v1995_v30, %v1994_v0  ;;  %v3612_v17 = vpop.f32.mrb[63].mxu1  ;;  %v3614_v7 = vpop.f32.mrb[63].mxu0  ;;  %v1676_v27 = vmax.f32 %v1628_v25, 0.0  ;;  %v1906_v32 = vadd.f32 %v3334_v56, %v1360_v39 }
 0x182   :  { %3960 = vst [vmem:[#allocation34_spill] sm:$0xff] %v3602_v45  ;;  %v1790_v50 = vsel %vm1431_vm2, %v1677_v23, -inf  ;;  %v1359_v2 = vadd.f32 %v1253_v47, %v3239_v4  ;;  %v1780_v13 = vrot.slane %v1779_v15, 1  ;;  %v1469_v24 = vrot.slane %v3482_v5, 2 }
 0x183   :  { %v1785_v63 = vmax.f32 %v1783_v21, %v1784_v26  ;;  %v1468_v58 = vrot.slane %v3489_v60, 2  ;;  %v1791_v0 = vmax.f32 %v1676_v27, %v1790_v50  ;;  %v1930_v3 = vmax.f32 %v1906_v32, 0.0 }
 0x184   :  { %v1255_v40 = vrot.slane %v3497_v51, 1  ;;  %v1254_v49 = vrot.slane %v3507_v59, 1  ;;  %v3623_v30 = vpop.f32.mrb[64].mxu1  ;;  %v3625_v23 = vpop.f32.mrb[64].mxu0  ;;  %v3627_v25 = vmax.f32 %v1779_v15, %v1780_v13  ;;  %v1577_v4 = vadd.f32 %v1469_v24, %v1360_v39 }
 0x185   :  { %v1786_v45 = vrot.slane %v1785_v63, 2  ;;  %v1470_v21 = vsel %vm1431_vm2, %v1468_v58, %v1469_v24  ;;  %v3630_v26 = vpop.f32.mrb[65].mxu1  ;;  %v3632_v5 = vpop.f32.mrb[65].mxu0  ;;  %v1792_v60 = vrot.slane %v1791_v0, 4  ;;  %v1997_v47 = vrot.slane %v1930_v3, 2 }
 0x186   :  { %3961 = vst [vmem:[#allocation35_spill] sm:$0xff] %v3627_v25  ;;  %v1576_v50 = vadd.f32 %v1470_v21, %v1359_v2  ;;  %v1362_v51 = vadd.f32 %v3243_v6, %v1255_v40  ;;  %v1631_v27 = vadd.f32 %v3334_v56, %v1577_v4  ;;  %v1256_v32 = vsel %vm1214_vm1, %v1254_v49, %v1255_v40 }
 0x187   :  { %v1787_v59 = vmax.f32 %v1785_v63, %v1786_v45  ;;  %v1472_v15 = vrot.slane %v3499_v36, 2  ;;  %v1793_v13 = vmax.f32 %v1791_v0, %v1792_v60  ;;  %v1998_v39 = vsel %vm1980_vm6, %v1997_v47, %v1996_v55 }
 0x188   :  { %v1630_v24 = vadd.f32 %v3334_v56, %v1576_v50  ;;  %v1907_v58 = vadd.f32 %v3334_v56, %v1362_v51  ;;  %v3641_v25 = vpop.f32.mrb[66].mxu1  ;;  %v3643_v3 = vpop.f32.mrb[66].mxu0  ;;  %v1679_v6 = vmax.f32 %v1631_v27, 0.0  ;;  %v1361_v45 = vadd.f32 %v1256_v32, %v3247_v8 }
 0x189   :  { %v1788_v2 = vrot.slane %v1787_v59, 1  ;;  %v1579_v63 = vadd.f32 %v1472_v15, %v1362_v51  ;;  %v3646_v4 = vpop.f32.mrb[67].mxu1  ;;  %v3648_v40 = vpop.f32.mrb[67].mxu0  ;;  %v1794_v36 = vrot.slane %v1793_v13, 2  ;;  %v1471_v49 = vrot.slane %v3509_v57, 2 }
 0x18a   :  { %3962 = vst [vmem:[#allocation36_spill] sm:$0xff] %v3648_v40  ;;  %v1678_v0 = vmax.f32 %v1630_v24, 0.0  ;;  %v1931_v55 = vmax.f32 %v1907_v58, 0.0  ;;  %v1798_v60 = vsel %vm1431_vm2, %v1679_v6, -inf  ;;  %v1258_v50 = vrot.slane %v3517_v62, 1 }
 0x18b   :  { %v3651_v21 = vmax.f32 %v1787_v59, %v1788_v2  ;;  %v1633_v47 = vadd.f32 %v3334_v56, %v1579_v63  ;;  %v1795_v27 = vmax.f32 %v1793_v13, %v1794_v36  ;;  %v1473_v32 = vsel %vm1431_vm2, %v1471_v49, %v1472_v15 }
 0x18c   :  { %v1799_v8 = vmax.f32 %v1678_v0, %v1798_v60  ;;  %v1999_v51 = vrot.slane %v1931_v55, 1  ;;  %v3657_v53 = vpop.f32.mrb[68].mxu1  ;;  %v3659_v40 = vpop.f32.mrb[68].mxu0  ;;  %v1578_v58 = vadd.f32 %v1473_v32, %v1361_v45  ;;  %v1364_v57 = vadd.f32 %v3251_v10, %v1258_v50 }
 0x18d   :  { %3963 = vst [vmem:[#allocation37_spill] sm:$0xff] %v3651_v21  ;;  %v1681_v24 = vmax.f32 %v1633_v47, 0.0  ;;  %v1257_v59 = vrot.slane %v3525_v11, 1  ;;  %v3663_v2 = vpop.f32.mrb[69].mxu1  ;;  %v3665_v6 = vpop.f32.mrb[69].mxu0  ;;  %v1796_v62 = vrot.slane %v1795_v27, 1 }
 0x18e   :  { %v1800_v13 = vrot.slane %v1799_v8, 4  ;;  %v2000_v63 = vsel %vm1983_vm7, %v1999_v51, %v1998_v39  ;;  %v1475_v15 = vrot.slane %v3519_v22, 2  ;;  %v1632_v0 = vadd.f32 %v3334_v56, %v1578_v58 }
 0x18f   :  { %v1806_v36 = vsel %vm1431_vm2, %v1681_v24, -inf  ;;  %v1908_v45 = vadd.f32 %v3334_v56, %v1364_v57  ;;  %v1259_v10 = vsel %vm1214_vm1, %v1257_v59, %v1258_v50  ;;  %v3673_v55 = vmax.f32 %v1795_v27, %v1796_v62 }
 0x190   :  { %v1801_v11 = vmax.f32 %v1799_v8, %v1800_v13  ;;  %v1363_v49 = vadd.f32 %v1259_v10, %v3255_v12  ;;  %v1581_v60 = vadd.f32 %v1475_v15, %v1364_v57  ;;  %v3676_v47 = vpop.f32.mrb[70].mxu1  ;;  %v3678_v32 = vpop.f32.mrb[70].mxu0  ;;  %v1680_v39 = vmax.f32 %v1632_v0, 0.0 }
 0x191   :  { %3964 = vst [vmem:[#allocation38_spill] sm:$0xff] %v3673_v55  ;;  %v1932_v22 = vmax.f32 %v1908_v45, 0.0  ;;  %v1474_v51 = vrot.slane %v3527_v19, 2  ;;  %v1261_v24 = vrot.slane %v3537_v29, 1  ;;  %v3682_v58 = vpop.f32.mrb[71].mxu1  ;;  %v3684_v21 = vpop.f32.mrb[71].mxu0 }
 0x192   :  { %3965 = vst [vmem:[#allocation39_spill] sm:$0xff] %v3684_v21  ;;  %v1802_v50 = vrot.slane %v1801_v11, 2  ;;  %v1635_v27 = vadd.f32 %v3334_v56, %v1581_v60  ;;  %v1260_v12 = vrot.slane %v3544_v41, 1  ;;  %v1478_v8 = vrot.slane %v3539_v61, 2 }
 0x193   :  { %v1807_v57 = vmax.f32 %v1680_v39, %v1806_v36  ;;  %v2001_v59 = vsel %vm1985_vm8, %v1932_v22, %v2000_v63  ;;  %v1476_v62 = vsel %vm1431_vm2, %v1474_v51, %v1475_v15  ;;  %v1366_v19 = vadd.f32 %v3259_v14, %v1261_v24 }
 0x194   :  { %v1803_v13 = vmax.f32 %v1801_v11, %v1802_v50  ;;  %v1683_v29 = vmax.f32 %v1635_v27, 0.0  ;;  %v1580_v0 = vadd.f32 %v1476_v62, %v1363_v49  ;;  %v1262_v45 = vsel %vm1214_vm1, %v1260_v12, %v1261_v24 }
 0x195   :  { %v1808_v10 = vrot.slane %v1807_v57, 4  ;;  %v1909_v55 = vadd.f32 %v3334_v56, %v1366_v19  ;;  %v1365_v60 = vadd.f32 %v1262_v45, %v3263_v16  ;;  %v1583_v41 = vadd.f32 %v1478_v8, %v1366_v19 }
 0x196   :  { %v1804_v21 = vrot.slane %v1803_v13, 1  ;;  %v1814_v61 = vsel %vm1431_vm2, %v1683_v29, -inf  ;;  %v1634_v63 = vadd.f32 %v3334_v56, %v1580_v0  ;;  %v1477_v15 = vrot.slane %v3546_v48, 2 }
 0x197   :  { %v1809_v36 = vmax.f32 %v1807_v57, %v1808_v10  ;;  %v1933_v14 = vmax.f32 %v1909_v55, 0.0  ;;  %v1637_v11 = vadd.f32 %v3334_v56, %v1583_v41  ;;  %v1264_v49 = vrot.slane %v3555_v33, 1 }
 0x198   :  { %v3700_v39 = vmax.f32 %v1803_v13, %v1804_v21  ;;  %v1682_v22 = vmax.f32 %v1634_v63, 0.0  ;;  %v1479_v51 = vsel %vm1431_vm2, %v1477_v15, %v1478_v8  ;;  %v1263_v16 = vrot.slane %v3563_v43, 1 }
 0x199   :  { %v1810_v24 = vrot.slane %v1809_v36, 2  ;;  %v2002_v50 = vrot.slane %v1933_v14, 7  ;;  %v1685_v27 = vmax.f32 %v1637_v11, 0.0  ;;  %v1582_v12 = vadd.f32 %v1479_v51, %v1365_v60 }
 0x19a   :  { %v1815_v62 = vmax.f32 %v1682_v22, %v1814_v61  ;;  %v1368_v48 = vadd.f32 %v3267_v18, %v1264_v49  ;;  %v1265_v55 = vsel %vm1214_vm1, %v1263_v16, %v1264_v49  ;;  %v1481_v57 = vrot.slane %v3557_v35, 2  ;;  %v3966_v22 = vld [vmem:[#allocation11_spill] sm:$0xff] }
 0x19b   :  { %v1811_v19 = vmax.f32 %v1809_v36, %v1810_v24  ;;  %v2003_v33 = vsel %vm1988_vm9, %v2002_v50, %v2001_v59  ;;  %v1822_v21 = vsel %vm1431_vm2, %v1685_v27, -inf  ;;  %v1636_v8 = vadd.f32 %v3334_v56, %v1582_v12  ;;  %v3967_v12 = vld [vmem:[#allocation12_spill] sm:$0xff] }
 0x19c   :  { %v1816_v13 = vrot.slane %v1815_v62, 4  ;;  %v3712_v43 = vsel %vm1944_vm10, %v2003_v33, 0.0  ;;  %v1910_v29 = vadd.f32 %v3334_v56, %v1368_v48  ;;  %v1367_v18 = vadd.f32 %v1265_v55, %v3271_v20  ;;  %v3724_v56 = vld [vmem:[%s3930_s2] ss:$0 sm:$0xff]  ;;  %s2837_s2 = smov [#allocation7]  }
 0x19d   :  { %v1812_v0 = vrot.slane %v1811_v19, 1  ;;  %v2034_v45 = vrot.slane %v3712_v43, 1  ;;  %v1684_v35 = vmax.f32 %v1636_v8, 0.0  ;;  %v1585_v10 = vadd.f32 %v1481_v57, %v1368_v48  ;;  %s2173_s13 = sshll.u32 %s2837_s2, 4  ;;  %s2174_s13 = int_to_ptr.vmem [resolvable:$true] %s2173_s13 }
 0x19e   :  { %v1817_v60 = vmax.f32 %v1815_v62, %v1816_v13  ;;  %v1934_v59 = vmax.f32 %v1910_v29, 0.0  ;;  %v1480_v41 = vrot.slane %v3565_v52, 2  ;;  %v1267_v61 = vrot.slane %v3574_v44, 1  ;;  %s2805_s14 = scalar_lea.vmem %s2174_s13, 384  ;;  %p2810_p3 = scmp.lt.s32.totalorder %s2174_s13, %s2174_s13 }
 0x19f   :  { %v3719_v63 = vmax.f32 %v1811_v19, %v1812_v0  ;;  %v1823_v15 = vmax.f32 %v1684_v35, %v1822_v21  ;;  %v1639_v20 = vadd.f32 %v3724_v56, %v1585_v10  ;;  %v1266_v36 = vrot.slane %v3579_v42, 1  ;;  %p2806_p2 = scmp.ne.s32.totalorder %s2174_s13, %s2805_s14  ;;  %p2811_p4 = scmp.lt.s32.totalorder %s2805_s14, %s2805_s14 }
 0x1a0   :  { %v1818_v14 = vrot.slane %v1817_v60, 2  ;;  %v2004_v11 = vrot.slane %v1934_v59, 6  ;;  %v1482_v49 = vsel %vm1431_vm2, %v1480_v41, %v1481_v57  ;;  %v1370_v52 = vadd.f32 %v3966_v22, %v1267_v61  ;;  %v3968_v59 = vld [vmem:[#allocation13_spill] sm:$0xff]  ;;  %v3969_v22 = vld [vmem:[#allocation14_spill] sm:$0xff] }
 0x1a1   :  { %v1824_v51 = vrot.slane %v1823_v15, 4  ;;  %v1687_v44 = vmax.f32 %v1639_v20, 0.0  ;;  %v1584_v16 = vadd.f32 %v1482_v49, %v1367_v18  ;;  %v1268_v24 = vsel %vm1214_vm1, %v1266_v36, %v1267_v61  ;;  %p2812_p5 = por %p2811_p4, %p2810_p3 }
 0x1a2   :  { %v3731_v50 = vmax.f32 %v1817_v60, %v1818_v14  ;;  %v1911_v27 = vadd.f32 %v3724_v56, %v1370_v52  ;;  %v1369_v62 = vadd.f32 %v1268_v24, %v3967_v12  ;;  %v1484_v48 = vrot.slane %v3576_v31, 2 }
 0x1a3   :  { %v1825_v42 = vmax.f32 %v1823_v15, %v1824_v51  ;;  %v1830_v55 = vsel %vm1431_vm2, %v1687_v44, -inf  ;;  %v1638_v57 = vadd.f32 %v3724_v56, %v1584_v16  ;;  %v1483_v19 = vrot.slane %v3581_v1, 2  ;;  %p2813_p6 = pnand %p2812_p5, %p2806_p2 }
 0x1a4   :  { %v1820_v33 = vrot.slane %v3731_v50, 1  ;;  %v1935_v21 = vmax.f32 %v1911_v27, 0.0  ;;  %v1587_v8 = vadd.f32 %v1484_v48, %v1370_v52  ;;  %v1270_v13 = vrot.slane %v3590_v37, 1 }
 0x1a5   :  { %v1826_v29 = vrot.slane %v1825_v42, 2  ;;  %v1686_v18 = vmax.f32 %v1638_v57, 0.0  ;;  %v1485_v0 = vsel %vm1431_vm2, %v1483_v19, %v1484_v48  ;;  %v1269_v35 = vrot.slane %v3595_v9, 1  ;;  %v3970_v19 = vld [vmem:[#allocation15_spill] sm:$0xff] }
 0x1a6   :  { %v2005_v31 = vrot.slane %v1935_v21, 5  ;;  %v1641_v10 = vadd.f32 %v3724_v56, %v1587_v8  ;;  %v1586_v60 = vadd.f32 %v1485_v0, %v1369_v62  ;;  %v1372_v41 = vadd.f32 %v3968_v59, %v1270_v13 }
 0x1a7   :  { %v3745_v61 = vmax.f32 %v1825_v42, %v1826_v29  ;;  %v1831_v1 = vmax.f32 %v1686_v18, %v1830_v55  ;;  %v1271_v15 = vsel %vm1214_vm1, %v1269_v35, %v1270_v13  ;;  %v1487_v20 = vrot.slane %v3592_v28, 2 }
 0x1a8   :  { %v2006_v37 = vsel %vm1971_vm3, %v2005_v31, %v2004_v11  ;;  %v1689_v36 = vmax.f32 %v1641_v10, 0.0  ;;  %v1640_v14 = vadd.f32 %v3724_v56, %v1586_v60  ;;  %v1912_v9 = vadd.f32 %v3724_v56, %v1372_v41  ;;  %v3971_v10 = vld [vmem:[#allocation16_spill] sm:$0xff] }
 0x1a9   :  { %v1832_v49 = vrot.slane %v1831_v1, 4  ;;  %v1371_v52 = vadd.f32 %v1271_v15, %v3969_v22  ;;  %v1589_v51 = vadd.f32 %v1487_v20, %v1372_v41  ;;  %v1486_v44 = vrot.slane %v3597_v34, 2 }
 0x1aa   :  { %v1838_v16 = vsel %vm1431_vm2, %v1689_v36, -inf  ;;  %v1688_v24 = vmax.f32 %v1640_v14, 0.0  ;;  %v1936_v27 = vmax.f32 %v1912_v9, 0.0  ;;  %v1273_v12 = vrot.slane %v3606_v46, 1 }
 0x1ab   :  { %v1833_v28 = vmax.f32 %v1831_v1, %v1832_v49  ;;  %v1643_v11 = vadd.f32 %v3724_v56, %v1589_v51  ;;  %v1488_v62 = vsel %vm1431_vm2, %v1486_v44, %v1487_v20  ;;  %v1272_v48 = vrot.slane %v3612_v17, 1 }
 0x1ac   :  { %v1839_v42 = vmax.f32 %v1688_v24, %v1838_v16  ;;  %v2007_v55 = vrot.slane %v1936_v27, 4  ;;  %v1588_v57 = vadd.f32 %v1488_v62, %v1371_v52  ;;  %v1374_v21 = vadd.f32 %v3970_v19, %v1273_v12  ;;  %v3972_v24 = vld [vmem:[#allocation17_spill] sm:$0xff] }
 0x1ad   :  { %v1834_v8 = vrot.slane %v1833_v28, 2  ;;  %v1691_v34 = vmax.f32 %v1643_v11, 0.0  ;;  %v1274_v13 = vsel %vm1214_vm1, %v1272_v48, %v1273_v12  ;;  %v1490_v29 = vrot.slane %v3608_v38, 2  ;;  %v3973_v48 = vld [vmem:[#allocation18_spill] sm:$0xff] }
 0x1ae   :  { %v1840_v18 = vrot.slane %v1839_v42, 4  ;;  %v2008_v46 = vsel %vm1974_vm4, %v2007_v55, %v2006_v37  ;;  %v1642_v0 = vadd.f32 %v3724_v56, %v1588_v57  ;;  %v1913_v35 = vadd.f32 %v3724_v56, %v1374_v21 }
 0x1af   :  { %v1835_v31 = vmax.f32 %v1833_v28, %v1834_v8  ;;  %v1846_v17 = vsel %vm1431_vm2, %v1691_v34, -inf  ;;  %v1373_v60 = vadd.f32 %v1274_v13, %v3971_v10  ;;  %v1591_v59 = vadd.f32 %v1490_v29, %v1374_v21 }
 0x1b0   :  { %v1841_v41 = vmax.f32 %v1839_v42, %v1840_v18  ;;  %v1690_v1 = vmax.f32 %v1642_v0, 0.0  ;;  %v1937_v15 = vmax.f32 %v1913_v35, 0.0  ;;  %v1489_v20 = vrot.slane %v3614_v7, 2 }
 0x1b1   :  { %v1836_v36 = vrot.slane %v1835_v31, 1  ;;  %v1645_v38 = vadd.f32 %v3724_v56, %v1591_v59  ;;  %v1276_v37 = vrot.slane %v3623_v30, 1  ;;  %v1275_v14 = vrot.slane %v3630_v26, 1 }
 0x1b2   :  { %v1842_v9 = vrot.slane %v1841_v41, 2  ;;  %v1847_v49 = vmax.f32 %v1690_v1, %v1846_v17  ;;  %v2009_v22 = vrot.slane %v1937_v15, 3  ;;  %v1491_v52 = vsel %vm1431_vm2, %v1489_v20, %v1490_v29 }
 0x1b3   :  { %v3772_v51 = vmax.f32 %v1835_v31, %v1836_v36  ;;  %v1693_v44 = vmax.f32 %v1645_v38, 0.0  ;;  %v1590_v16 = vadd.f32 %v1491_v52, %v1373_v60  ;;  %v1376_v27 = vadd.f32 %v3972_v24, %v1276_v37  ;;  %v3974_v60 = vld [vmem:[#allocation19_spill] sm:$0xff] }
 0x1b4   :  { %v1843_v12 = vmax.f32 %v1841_v41, %v1842_v9  ;;  %v1848_v7 = vrot.slane %v1847_v49, 4  ;;  %v2010_v28 = vsel %vm1977_vm5, %v2009_v22, %v2008_v46  ;;  %v1277_v11 = vsel %vm1214_vm1, %v1275_v14, %v1276_v37  ;;  %v3975_v37 = vld [vmem:[#allocation20_spill] sm:$0xff] }
 0x1b5   :  { %v1854_v30 = vsel %vm1431_vm2, %v1693_v44, -inf  ;;  %v1644_v26 = vadd.f32 %v3724_v56, %v1590_v16  ;;  %v1914_v62 = vadd.f32 %v3724_v56, %v1376_v27  ;;  %v1375_v42 = vadd.f32 %v1277_v11, %v3973_v48  ;;  %v3976_v44 = vld [vmem:[#allocation36_spill] sm:$0xff]  ;;  %v3977_v48 = vld [vmem:[#allocation21_spill] sm:$0xff] }
 0x1b6   :  { %v1844_v55 = vrot.slane %v1843_v12, 1  ;;  %v1849_v57 = vmax.f32 %v1847_v49, %v1848_v7  ;;  %v1493_v19 = vrot.slane %v3625_v23, 2  ;;  %v1492_v21 = vrot.slane %v3632_v5, 2 }
 0x1b7   :  { %v1692_v8 = vmax.f32 %v1644_v26, 0.0  ;;  %v1938_v34 = vmax.f32 %v1914_v62, 0.0  ;;  %v1279_v13 = vrot.slane %v3641_v25, 1  ;;  %v1278_v29 = vrot.slane %v3646_v4, 1 }
 0x1b8   :  { %v3785_v18 = vmax.f32 %v1843_v12, %v1844_v55  ;;  %v1850_v46 = vrot.slane %v1849_v57, 2  ;;  %v1593_v0 = vadd.f32 %v1493_v19, %v1376_v27  ;;  %v1494_v35 = vsel %vm1431_vm2, %v1492_v21, %v1493_v19 }
 0x1b9   :  { %v1855_v31 = vmax.f32 %v1692_v8, %v1854_v30  ;;  %v2011_v17 = vrot.slane %v1938_v34, 2  ;;  %v1592_v10 = vadd.f32 %v1494_v35, %v1375_v42  ;;  %v1378_v59 = vadd.f32 %v3974_v60, %v1279_v13  ;;  %v3978_v35 = vld [vmem:[#allocation22_spill] sm:$0xff] }
 0x1ba   :  { %v1851_v23 = vmax.f32 %v1849_v57, %v1850_v46  ;;  %v1647_v5 = vadd.f32 %v3724_v56, %v1593_v0  ;;  %v1280_v41 = vsel %vm1214_vm1, %v1278_v29, %v1279_v13  ;;  %v1496_v25 = vrot.slane %v3643_v3, 2 }
 0x1bb   :  { %v1856_v1 = vrot.slane %v1855_v31, 4  ;;  %v2012_v4 = vsel %vm1980_vm6, %v2011_v17, %v2010_v28  ;;  %v1646_v15 = vadd.f32 %v3724_v56, %v1592_v10  ;;  %v1915_v20 = vadd.f32 %v3724_v56, %v1378_v59 }
 0x1bc   :  { %v1852_v36 = vrot.slane %v1851_v23, 1  ;;  %v1695_v38 = vmax.f32 %v1647_v5, 0.0  ;;  %v1377_v14 = vadd.f32 %v1280_v41, %v3975_v37  ;;  %v1595_v9 = vadd.f32 %v1496_v25, %v1378_v59 }
 0x1bd   :  { %v1857_v49 = vmax.f32 %v1855_v31, %v1856_v1  ;;  %v1694_v22 = vmax.f32 %v1646_v15, 0.0  ;;  %v1939_v52 = vmax.f32 %v1915_v20, 0.0  ;;  %v1495_v16 = vrot.slane %v3976_v44, 2  ;;  %v3979_v15 = vld [vmem:[#allocation23_spill] sm:$0xff] }
 0x1be   :  { %v3797_v24 = vmax.f32 %v1851_v23, %v1852_v36  ;;  %v1862_v3 = vsel %vm1431_vm2, %v1695_v38, -inf  ;;  %v1649_v27 = vadd.f32 %v3724_v56, %v1595_v9  ;;  %v1282_v12 = vrot.slane %v3657_v53, 1  ;;  %v3980_v9 = vld [vmem:[#allocation24_spill] sm:$0xff] }
 0x1bf   :  { %v1858_v7 = vrot.slane %v1857_v49, 2  ;;  %v1863_v28 = vmax.f32 %v1694_v22, %v1862_v3  ;;  %v2013_v11 = vrot.slane %v1939_v52, 1  ;;  %v1497_v30 = vsel %vm1431_vm2, %v1495_v16, %v1496_v25  ;;  %v3981_v16 = vld [vmem:[#allocation39_spill] sm:$0xff] }
 0x1c0   :  { %v1697_v26 = vmax.f32 %v1649_v27, 0.0  ;;  %v1594_v62 = vadd.f32 %v1497_v30, %v1377_v14  ;;  %v1380_v42 = vadd.f32 %v3977_v48, %v1282_v12  ;;  %v1281_v55 = vrot.slane %v3663_v2, 1 }
 0x1c1   :  { %v1859_v57 = vmax.f32 %v1857_v49, %v1858_v7  ;;  %v1864_v19 = vrot.slane %v1863_v28, 4  ;;  %v2014_v21 = vsel %vm1983_vm7, %v2013_v11, %v2012_v4  ;;  %v1499_v8 = vrot.slane %v3659_v40, 2 }
 0x1c2   :  { %v1870_v34 = vsel %vm1431_vm2, %v1697_v26, -inf  ;;  %v1648_v53 = vadd.f32 %v3724_v56, %v1594_v62  ;;  %v1916_v13 = vadd.f32 %v3724_v56, %v1380_v42  ;;  %v1283_v29 = vsel %vm1214_vm1, %v1281_v55, %v1282_v12 }
 0x1c3   :  { %v1860_v46 = vrot.slane %v1859_v57, 1  ;;  %v1865_v0 = vmax.f32 %v1863_v28, %v1864_v19  ;;  %v1379_v31 = vadd.f32 %v1283_v29, %v3978_v35  ;;  %v1597_v17 = vadd.f32 %v1499_v8, %v1380_v42  ;;  %v3982_v28 = vld [vmem:[#allocation32_spill] sm:$0xff] }
 0x1c4   :  { %v1696_v2 = vmax.f32 %v1648_v53, 0.0  ;;  %v1940_v10 = vmax.f32 %v1916_v13, 0.0  ;;  %v1498_v60 = vrot.slane %v3665_v6, 2  ;;  %v1285_v59 = vrot.slane %v3676_v47, 1 }
 0x1c5   :  { %v3814_v40 = vmax.f32 %v1859_v57, %v1860_v46  ;;  %v1866_v23 = vrot.slane %v1865_v0, 2  ;;  %v1651_v5 = vadd.f32 %v3724_v56, %v1597_v17  ;;  %v1284_v41 = vrot.slane %v3682_v58, 1 }
 0x1c6   :  { %v1871_v25 = vmax.f32 %v1696_v2, %v1870_v34  ;;  %v2015_v1 = vsel %vm1985_vm8, %v1940_v10, %v2014_v21  ;;  %v1500_v4 = vsel %vm1431_vm2, %v1498_v60, %v1499_v8  ;;  %v1382_v20 = vadd.f32 %v3979_v15, %v1285_v59  ;;  %v3985_v10 = vld [vmem:[#allocation30_spill] sm:$0xff] }
 0x1c7   :  { %v1867_v36 = vmax.f32 %v1865_v0, %v1866_v23  ;;  %v1699_v38 = vmax.f32 %v1651_v5, 0.0  ;;  %v1596_v37 = vadd.f32 %v1500_v4, %v1379_v31  ;;  %v1286_v6 = vsel %vm1214_vm1, %v1284_v41, %v1285_v59 }
 0x1c8   :  { %v1872_v47 = vrot.slane %v1871_v25, 4  ;;  %v1917_v14 = vadd.f32 %v3724_v56, %v1382_v20  ;;  %v1381_v49 = vadd.f32 %v1286_v6, %v3980_v9  ;;  %v1502_v22 = vrot.slane %v3678_v32, 2  ;;  %v3984_v32 = vld [vmem:[#allocation33_spill] sm:$0xff] }
 0x1c9   :  { %v1868_v58 = vrot.slane %v1867_v36, 1  ;;  %v1878_v52 = vsel %vm1431_vm2, %v1699_v38, -inf  ;;  %v1650_v44 = vadd.f32 %v3724_v56, %v1596_v37  ;;  %v1501_v3 = vrot.slane %v3981_v16, 2 }
 0x1ca   :  { %v1873_v27 = vmax.f32 %v1871_v25, %v1872_v47  ;;  %v1941_v12 = vmax.f32 %v1917_v14, 0.0  ;;  %v1599_v7 = vadd.f32 %v1502_v22, %v1382_v20  ;;  %v3983_v11 = vrot.slane %v3982_v28, 1 }
 0x1cb   :  { %v3831_v26 = vmax.f32 %v1867_v36, %v1868_v58  ;;  %v1698_v62 = vmax.f32 %v1650_v44, 0.0  ;;  %v1503_v48 = vsel %vm1431_vm2, %v1501_v3, %v1502_v22  ;;  %v1764_v42 = vrot.slane %v3984_v32, 1 }
 0x1cc   :  { %v1757_v30 = vmax.f32 %v3982_v28, %v3983_v11  ;;  %v1874_v55 = vrot.slane %v1873_v27, 2  ;;  %v2016_v57 = vrot.slane %v1941_v12, 7  ;;  %v1653_v19 = vadd.f32 %v3724_v56, %v1599_v7  ;;  %v3986_v12 = vld [vmem:[#allocation25_spill] sm:$0xff]  ;;  %v3988_v11 = vld [vmem:[#allocation26_spill] sm:$0xff] }
 0x1cd   :  { %v1598_v21 = vadd.f32 %v1503_v48, %v1381_v49  ;;  %v1879_v8 = vmax.f32 %v1698_v62, %v1878_v52  ;;  %v1765_v34 = vmax.f32 %v3984_v32, %v1764_v42  ;;  %v1821_v53 = vmax.f32 %v3731_v50, %v1820_v33  ;;  %v3989_v48 = vld [vmem:[#allocation27_spill] sm:$0xff] }
 0x1ce   :  { %v1828_v13 = vrot.slane %v3745_v61, 1  ;;  %v1875_v29 = vmax.f32 %v1873_v27, %v1874_v55  ;;  %v2017_v46 = vsel %vm1988_vm9, %v2016_v57, %v2015_v1  ;;  %v1701_v0 = vmax.f32 %v1653_v19, 0.0  ;;  %v3990_v55 = vld [vmem:[#allocation28_spill] sm:$0xff]  ;;  %v3991_v19 = vld [vmem:[#allocation29_spill] sm:$0xff] }
 0x1cf   :  { %v1652_v35 = vadd.f32 %v3724_v56, %v1598_v21  ;;  %v1880_v31 = vrot.slane %v1879_v8, 4  ;;  %v3845_v17 = vsel %vm1944_vm10, %v2017_v46, 0.0  ;;  %v2028_v60 = vrot.slane %v3985_v10, 2 }
 0x1d0   :  { %v1829_v2 = vmax.f32 %v3745_v61, %v1828_v13  ;;  %v1876_v59 = vrot.slane %v1875_v29, 1  ;;  %v2041_v50 = vrot.slane %v3845_v17, 1  ;;  %v1886_v33 = vsel %vm1431_vm2, %v1701_v0, -inf }
 0x1d1   :  { %v1700_v23 = vmax.f32 %v1652_v35, 0.0  ;;  %v1881_v5 = vmax.f32 %v1879_v8, %v1880_v31  ;;  %v2029_v41 = vrot.slane %v3985_v10, 3  ;;  %v2030_v56 = vrot.slane %v3985_v10, 4  ;;  %v3992_v8 = vld [vmem:[#allocation31_spill] sm:$0xff]  ;;  %v3993_v35 = vld [vmem:[#allocation34_spill] sm:$0xff] }
 0x1d2   :  { %v2031_v25 = vrot.slane %v3985_v10, 5  ;;  %v1877_v54 = vmax.f32 %v1875_v29, %v1876_v59  ;;  %v2032_v4 = vrot.slane %v3985_v10, 6  ;;  %v2033_v61 = vrot.slane %v3985_v10, 7 }
 0x1d3   :  { %v1887_v1 = vmax.f32 %v1700_v23, %v1886_v33  ;;  %v1882_v15 = vrot.slane %v1881_v5, 2  ;;  %v2035_v20 = vrot.slane %v3712_v43, 2  ;;  %v2036_v36 = vrot.slane %v3712_v43, 3  ;;  %v3995_v23 = vld [vmem:[#allocation37_spill] sm:$0xff] }
 0x1d4   :  { %v2037_v38 = vrot.slane %v3712_v43, 4  ;;  %v2038_v6 = vrot.slane %v3712_v43, 5  ;;  %v2039_v47 = vrot.slane %v3712_v43, 6  ;;  %v2040_v14 = vrot.slane %v3712_v43, 7 }
 0x1d5   :  { %v1888_v37 = vrot.slane %v1887_v1, 4  ;;  %v1883_v9 = vmax.f32 %v1881_v5, %v1882_v15  ;;  %v2042_v49 = vrot.slane %v3845_v17, 2  ;;  %v2043_v22 = vrot.slane %v3845_v17, 3  ;;  %v3996_v5 = vld [vmem:[#allocation38_spill] sm:$0xff] }
 0x1d6   :  { %v2044_v58 = vrot.slane %v3845_v17, 4  ;;  %v2045_v44 = vrot.slane %v3845_v17, 5  ;;  %v2046_v16 = vrot.slane %v3845_v17, 6  ;;  %v2047_v3 = vrot.slane %v3845_v17, 7 }
 0x1d7   :  { %v1889_v52 = vmax.f32 %v1887_v1, %v1888_v37  ;;  %v1884_v27 = vrot.slane %v1883_v9, 1  ;;  %v2072_v7 = vmax.f32 %v3986_v12, %v3985_v10  ;;  %v3987_v28 = vrot.slane %v3985_v10, 1  ;;  %v3994_v10 = vld [vmem:[#allocation35_spill] sm:$0xff] }
 0x1d8   :  { %v2074_v32 = vmax.f32 %v3989_v48, %v2028_v60  ;;  %v2075_v57 = vmax.f32 %v3990_v55, %v2029_v41  ;;  %v2076_v21 = vmax.f32 %v3991_v19, %v2030_v56  ;;  %v2077_v13 = vmax.f32 %v3992_v8, %v2031_v25 }
 0x1d9   :  { %v2073_v62 = vmax.f32 %v3988_v11, %v3987_v28  ;;  %v1890_v42 = vrot.slane %v1889_v52, 2  ;;  %v1885_v29 = vmax.f32 %v1883_v9, %v1884_v27  ;;  %v2078_v46 = vmax.f32 %v1757_v30, %v2032_v4 }
 0x1da   :  { %v2079_v0 = vmax.f32 %v1765_v34, %v2033_v61  ;;  %v2080_v31 = vmax.f32 %v3993_v35, %v3712_v43  ;;  %v2081_v33 = vmax.f32 %v3994_v10, %v2034_v45  ;;  %v2082_v60 = vmax.f32 %v3995_v23, %v2035_v20 }
 0x1db   :  { %v1891_v59 = vmax.f32 %v1889_v52, %v1890_v42  ;;  %v2083_v1 = vmax.f32 %v3996_v5, %v2036_v36  ;;  %v2084_v41 = vmax.f32 %v3700_v39, %v2037_v38  ;;  %v2085_v56 = vmax.f32 %v3719_v63, %v2038_v6 }
 0x1dc   :  { %v2086_v25 = vmax.f32 %v1821_v53, %v2039_v47  ;;  %v2087_v15 = vmax.f32 %v1829_v2, %v2040_v14  ;;  %v2088_v34 = vmax.f32 %v3772_v51, %v3845_v17  ;;  %v2089_v4 = vmax.f32 %v3785_v18, %v2041_v50 }
 0x1dd   :  { %v1892_v30 = vrot.slane %v1891_v59, 1  ;;  %v2090_v43 = vmax.f32 %v3797_v24, %v2042_v49  ;;  %v2091_v45 = vmax.f32 %v3814_v40, %v2043_v22  ;;  %v2092_v61 = vmax.f32 %v3831_v26, %v2044_v58 }
 0x1de   :  { %v2093_v20 = vmax.f32 %v1877_v54, %v2045_v44  ;;  %v2094_v36 = vmax.f32 %v1885_v29, %v2046_v16  ;;  %v2120_v39 = vrot.slane %v2073_v62, 7  ;;  %v2122_v38 = vrot.slane %v2074_v32, 6 }
 0x1df   :  { %v1893_v37 = vmax.f32 %v1891_v59, %v1892_v30  ;;  %v2124_v63 = vrot.slane %v2075_v57, 5  ;;  %v2126_v53 = vrot.slane %v2076_v21, 4  ;;  %v2128_v2 = vrot.slane %v2077_v13, 3 }
 0x1e0   :  { %v2130_v6 = vrot.slane %v2078_v46, 2  ;;  %v2132_v47 = vrot.slane %v2079_v0, 1  ;;  %v2121_v51 = vsel %vm1971_vm3, %v2120_v39, %v2072_v7  ;;  %v2134_v18 = vrot.slane %v2081_v33, 7 }
 0x1e1   :  { %v2095_v14 = vmax.f32 %v1893_v37, %v2047_v3  ;;  %v2136_v17 = vrot.slane %v2082_v60, 6  ;;  %v2123_v24 = vsel %vm1974_vm4, %v2122_v38, %v2121_v51  ;;  %v2138_v40 = vrot.slane %v2083_v1, 5 }
 0x1e2   :  { %v2140_v50 = vrot.slane %v2084_v41, 4  ;;  %v2142_v26 = vrot.slane %v2085_v56, 3  ;;  %v2125_v54 = vsel %vm1977_vm5, %v2124_v63, %v2123_v24  ;;  %v2135_v9 = vsel %vm1971_vm3, %v2134_v18, %v2080_v31 }
 0x1e3   :  { %v2144_v49 = vrot.slane %v2086_v25, 2  ;;  %v2146_v22 = vrot.slane %v2087_v15, 1  ;;  %v2127_v58 = vsel %vm1980_vm6, %v2126_v53, %v2125_v54  ;;  %v2137_v52 = vsel %vm1974_vm4, %v2136_v17, %v2135_v9 }
 0x1e4   :  { %v2148_v44 = vrot.slane %v2089_v4, 7  ;;  %v2150_v16 = vrot.slane %v2090_v43, 6  ;;  %v2129_v3 = vsel %vm1983_vm7, %v2128_v2, %v2127_v58  ;;  %v2139_v27 = vsel %vm1977_vm5, %v2138_v40, %v2137_v52 }
 0x1e5   :  { %v2152_v12 = vrot.slane %v2091_v45, 5  ;;  %v2154_v7 = vrot.slane %v2092_v61, 4  ;;  %v2131_v28 = vsel %vm1985_vm8, %v2130_v6, %v2129_v3  ;;  %v2141_v11 = vsel %vm1980_vm6, %v2140_v50, %v2139_v27 }
 0x1e6   :  { %v2149_v62 = vsel %vm1971_vm3, %v2148_v44, %v2088_v34  ;;  %v2156_v48 = vrot.slane %v2093_v20, 3  ;;  %v2133_v32 = vsel %vm1988_vm9, %v2132_v47, %v2131_v28  ;;  %v2143_v42 = vsel %vm1983_vm7, %v2142_v26, %v2141_v11 }
 0x1e7   :  { %v2151_v55 = vsel %vm1974_vm4, %v2150_v16, %v2149_v62  ;;  %v2158_v57 = vrot.slane %v2094_v36, 2  ;;  %v2145_v19 = vsel %vm1985_vm8, %v2144_v49, %v2143_v42  ;;  %v2160_v8 = vrot.slane %v2095_v14, 1  ;;  %2165 = vst [vmem:[#allocation7] sm:$0xff] %v2133_v32 }
 0x1e8   :  { %v2153_v21 = vsel %vm1977_vm5, %v2152_v12, %v2151_v55  ;;  %v2147_v13 = vsel %vm1988_vm9, %v2146_v22, %v2145_v19 }
 0x1e9   :  { %v2155_v29 = vsel %vm1980_vm6, %v2154_v7, %v2153_v21  ;;  %2166 = vst [vmem:[#allocation7 + $0x8] sm:$0xff] %v2147_v13 }
 0x1ea   :  { %v2157_v46 = vsel %vm1983_vm7, %v2156_v48, %v2155_v29 }
 0x1eb   :  { %v2159_v0 = vsel %vm1985_vm8, %v2158_v57, %v2157_v46 }
 0x1ec   :  { %v2161_v35 = vsel %vm1988_vm9, %v2160_v8, %v2159_v0 }
 0x1ed   :  { %2167 = vst [vmem:[#allocation7 + $0x10] sm:$0xff] %v2161_v35 }
 0x1ee   :  { %2816 = shalt.err (!%p2813_p6)
}
 0x1ef   :  { %s2817_s17 = scalar_lea.hbm %s3931_s3, 384 }
 0x1f0   :  { %p2818_p7 = scmp.ne.s32.totalorder %s3931_s3, %s2817_s17  ;;  %p2821_p8 = scmp.lt.u32.totalorder %s2817_s17, %s3931_s3 }
 0x1f2   :  { %p2823_p9 = pnand %p2821_p8, %p2818_p7 }
 0x1f4   :  { %2826 = shalt.err (!%p2823_p9)
}
 0x1f5   :  { %2179 = dma.vmem_to_hbm [thread:$0]  %s2174_s13, 384, %s3931_s3, [#allocation4], %s2834_s22, %s2834_s22, %s2835_s23  }
 0x1f6   :  { %2831 = dma.done.wait [#allocation4], 384  }
 0x1f7   :  { %2832 = vsyncadd [#allocation4], 4294966912 }
 0x1f8   :  { %2183 = vsyncpa [#allocation3], 1 }
 0x1f9   :  { %2184 = vsyncpa [#allocation6], 1 }
 0x1fa   :  { %2185 = vsyncpa [#allocation4], 1 }

</bundles_post_ra>
